<compile_context>
chip_gen: v7x
topology: tpu7x:2x2x1
jax: 0.10.0
libtpu: 0.0.40
codegen_flags: <defaults>
</compile_context>

<pallas_src>
import jax
import jax.numpy as jnp
from jax import lax
from jax.experimental import pallas as pl
from jax.experimental.pallas import tpu as pltpu

IN_FEAT = 75      # input joint vector size
FC1 = 70          # first FC layer
FC2 = 64          # modified_input_dim (LSTM input size)
HIDDEN = 64       # LSTM hidden size
LABELS = 49       # label_size

PAD = 128         # lane-padded width for all contraction / hidden dims
GATE_PAD = 128    # each LSTM gate gets its own 128-lane block
B_TILE = 8        # sequences per grid step: fills the f32 sublane group. Raise (64/128)
                  # to fill more MXU rows when many sequences are available per call.
NEG_INF = -1e30   # mask value for padded label lanes (finite -> no inf-inf NaN risk)


def lstm_classifier_kernel(x_ref, w1_ref, b1_ref, w2_ref, b2_ref,
                           wih_ref, whh_ref, bl_ref, wlab_ref, blab_ref,
                           out_ref, gx_ref):
    TB = gx_ref.shape[0]          # T * B_TILE rows for this batch chunk
    B = out_ref.shape[1]          # B_TILE
    T = TB // B
    GP = GATE_PAD
    bf16 = jnp.bfloat16

    # ---- fully_connected, all timesteps & all sequences of the chunk at once ----
    x = x_ref[...].reshape(TB, PAD)                                       # f32 (TB,128)
    h1 = jnp.maximum(
        jnp.dot(x.astype(bf16), w1_ref[...],
                preferred_element_type=jnp.float32) + b1_ref[...], 0.0)
    fc = jnp.maximum(
        jnp.dot(h1.astype(bf16), w2_ref[...],
                preferred_element_type=jnp.float32) + b2_ref[...], 0.0)

    # ---- hoisted input projection for ALL timesteps: gates_x = fc @ W_ih + b ----
    # (TB, 4*128); gate k lives in lanes [k*128, k*128+64), padding lanes are exactly 0.
    gx_ref[...] = (jnp.dot(fc.astype(bf16), wih_ref[...],
                           preferred_element_type=jnp.float32) + bl_ref[...])

    whh = whh_ref[...]                                                    # bf16 (128,512)

    # ---- LSTM recurrence over B_TILE independent sequences. h/c are (B,128); lanes
    # 64..127 stay exactly 0 because padded weight rows/cols are zero (pad-lane gates
    # give i=f=o=0.5, g=0).
    def step(t, carry):
        h, c = carry
        row = pl.multiple_of(t * B, B)
        gates = gx_ref[pl.ds(row, B), :] + jnp.dot(
            h.astype(bf16), whh, preferred_element_type=jnp.float32)      # (B, 512) f32
        s = jax.nn.sigmoid(gates)                                         # one wide EUP pass
        i = s[:, 0 * GP:1 * GP]
        f = s[:, 1 * GP:2 * GP]
        g = 2.0 * s[:, 2 * GP:3 * GP] - 1.0                               # tanh(z)=2*sig(2z)-1
        o = s[:, 3 * GP:4 * GP]
        c_new = f * c + i * g
        h_new = o * jnp.tanh(c_new)
        return (h_new, c_new)

    h0 = jnp.zeros((B, PAD), jnp.float32)
    c0 = jnp.zeros((B, PAD), jnp.float32)
    h_last, _ = lax.fori_loop(0, T, step, (h0, c0), unroll=True)          # lstm_out[-1]

    # ---- hidden2label + log_softmax, lane-dense 128-wide slab. Padded logit lanes are
    # -1e30 (baked into the bias), so exp() kills them in the normalizer.
    y = (jnp.dot(h_last.astype(bf16), wlab_ref[...],
                 preferred_element_type=jnp.float32) + blab_ref[...])     # (B, 128)
    m = jnp.max(y, axis=-1, keepdims=True)
    z = y - m
    logz = z - jnp.log(jnp.sum(jnp.exp(z), axis=-1, keepdims=True))
    out_ref[...] = logz[None, :, :]


def lstm_classifier_forward(x, prepared_params):
    """x: (T, B, 75) float32, time-major like PyTorch's (seq, batch, feat); the original
    module is the B == 1 case. Returns (B, 49) log-probs (one row per sequence)."""
    T, B = int(x.shape[0]), int(x.shape[1])
    NC = pl.cdiv(B, B_TILE)            # number of batch chunks (grid size)
    B_pad = NC * B_TILE
    TB = T * B_TILE
    GP4 = 4 * GATE_PAD

    # Layout: chunk-major, then time-major inside a chunk, feature dim lane-padded.
    xb = jnp.zeros((T, B_pad, IN_FEAT), jnp.float32).at[:, :B, :].set(
        x.reshape(T, B, IN_FEAT))
    xb = xb.reshape(T, NC, B_TILE, IN_FEAT).transpose(1, 0, 2, 3).reshape(
        NC, TB, IN_FEAT)
    xp = jnp.zeros((NC, TB, PAD), jnp.float32).at[:, :, :IN_FEAT].set(xb)

    (w1p, b1p, w2p, b2p, wihp, whhp, blp, wlabp, blabp) = prepared_params

    flops = NC * (2 * TB * PAD * PAD * 2 + 2 * TB * PAD * GP4
                  + T * 2 * B_TILE * PAD * GP4 + 2 * B_TILE * PAD * PAD)
    transcendentals = NC * (T * B_TILE * (GP4 + PAD) + B_TILE * PAD)
    bytes_accessed = (4 * (NC * TB * PAD + NC * B_TILE * PAD)
                      + 2 * (2 * PAD * PAD + 2 * PAD * GP4 + PAD * PAD)
                      + 4 * (3 * PAD + GP4))

    in_specs = [
        pl.BlockSpec((1, TB, PAD), lambda i: (i, 0, 0)),      # x chunk
        pl.BlockSpec((PAD, PAD), lambda i: (0, 0)),           # w1   (bf16)
        pl.BlockSpec((1, PAD), lambda i: (0, 0)),             # b1   (f32)
        pl.BlockSpec((PAD, PAD), lambda i: (0, 0)),           # w2   (bf16)
        pl.BlockSpec((1, PAD), lambda i: (0, 0)),             # b2   (f32)
        pl.BlockSpec((PAD, GP4), lambda i: (0, 0)),           # W_ih (bf16)
        pl.BlockSpec((PAD, GP4), lambda i: (0, 0)),           # W_hh (bf16)
        pl.BlockSpec((1, GP4), lambda i: (0, 0)),             # LSTM bias (f32)
        pl.BlockSpec((PAD, PAD), lambda i: (0, 0)),           # hidden2label W (bf16)
        pl.BlockSpec((1, PAD), lambda i: (0, 0)),             # hidden2label b (-1e30 pad)
    ]
    out_specs = pl.BlockSpec((1, B_TILE, PAD), lambda i: (i, 0, 0))

    out = pl.pallas_call(
        lstm_classifier_kernel,
        out_shape=jax.ShapeDtypeStruct((NC, B_TILE, PAD), jnp.float32),
        grid=(NC,),
        in_specs=in_specs,
        out_specs=out_specs,
        scratch_shapes=[pltpu.VMEM((TB, GP4), jnp.float32)],
        compiler_params=pltpu.CompilerParams(
            dimension_semantics=("parallel",)),
        cost_estimate=pl.CostEstimate(flops=flops,
                                      transcendentals=transcendentals,
                                      bytes_accessed=bytes_accessed),
    )(xp, w1p, b1p, w2p, b2p, wihp, whhp, blp, wlabp, blabp)
    # TODO(synk): for long sequences, add a second ("arbitrary") grid axis chunking T
    # into blocks of a few hundred steps with h/c carried in persistent VMEM scratch so
    # the gates_x scratch stays well under v7x's 64 MiB (32 MiB default scoped) VMEM;
    # do NOT make the grid one-timestep-per-iteration (~0.35 us/step overhead).

    return out.reshape(B_pad, PAD)[:B, :LABELS]


def init_params(key):
    """Deterministic PyTorch-style uniform(-1/sqrt(fan_in)) init, weights pre-transposed
    to (in_features, out_features). These are the *logical* (unpadded, f32) params."""
    ks = jax.random.split(key, 10)

    def unif(k, shape, fan_in):
        bound = 1.0 / jnp.sqrt(float(fan_in))
        return jax.random.uniform(k, shape, jnp.float32, -bound, bound)

    w1 = unif(ks[0], (IN_FEAT, FC1), IN_FEAT)          # Linear(75,70) weight^T
    b1 = unif(ks[1], (1, FC1), IN_FEAT)
    w2 = unif(ks[2], (FC1, FC2), FC1)                  # Linear(70,64) weight^T
    b2 = unif(ks[3], (1, FC2), FC1)
    wih = unif(ks[4], (FC2, 4 * HIDDEN), HIDDEN)       # LSTM weight_ih^T
    whh = unif(ks[5], (HIDDEN, 4 * HIDDEN), HIDDEN)    # LSTM weight_hh^T
    b_ih = unif(ks[6], (1, 4 * HIDDEN), HIDDEN)
    b_hh = unif(ks[7], (1, 4 * HIDDEN), HIDDEN)
    bl = b_ih + b_hh                                   # combined LSTM bias
    wlab = unif(ks[8], (HIDDEN, LABELS), HIDDEN)       # hidden2label weight^T
    blab = unif(ks[9], (1, LABELS), HIDDEN)
    return (w1, b1, w2, b2, wih, whh, bl, wlab, blab)


def prepare_params(params):
    """One-time layout transform: pad contraction dims to 128, give each LSTM gate its
    own 128-lane block, pre-scale the g-gate (columns + bias) by 2 so one wide sigmoid
    yields tanh via 2*s-1, cast all MXU operands to bf16 (biases stay f32, added after
    f32 accumulation), and bake a -1e30 mask into the padded label-bias lanes.  Padding
    is zero-filled, which keeps the padded h/c lanes identically zero through the
    recurrence (exact semantics preserved; bf16 cast of exact zeros is exact)."""
    (w1, b1, w2, b2, wih, whh, bl, wlab, blab) = params
    GP = GATE_PAD
    bf16 = jnp.bfloat16

    w1p = jnp.zeros((PAD, PAD), jnp.float32).at[:IN_FEAT, :FC1].set(w1).astype(bf16)
    b1p = jnp.zeros((1, PAD), jnp.float32).at[:, :FC1].set(b1)
    w2p = jnp.zeros((PAD, PAD), jnp.float32).at[:FC1, :FC2].set(w2).astype(bf16)
    b2p = jnp.zeros((1, PAD), jnp.float32).at[:, :FC2].set(b2)

    gate_scale = [1.0, 1.0, 2.0, 1.0]                  # i, f, g(x2 for tanh trick), o
    wihp = jnp.zeros((PAD, 4 * GP), jnp.float32)
    whhp = jnp.zeros((PAD, 4 * GP), jnp.float32)
    blp = jnp.zeros((1, 4 * GP), jnp.float32)
    for k in range(4):
        sc = gate_scale[k]
        src = slice(k * HIDDEN, (k + 1) * HIDDEN)
        dst = slice(k * GP, k * GP + HIDDEN)
        wihp = wihp.at[:FC2, dst].set(sc * wih[:, src])
        whhp = whhp.at[:HIDDEN, dst].set(sc * whh[:, src])
        blp = blp.at[:, dst].set(sc * bl[:, src])
    wihp = wihp.astype(bf16)
    whhp = whhp.astype(bf16)

    wlabp = jnp.zeros((PAD, PAD), jnp.float32).at[:HIDDEN, :LABELS].set(wlab).astype(bf16)
    blabp = jnp.full((1, PAD), NEG_INF, jnp.float32).at[:, :LABELS].set(blab)
    return (w1p, b1p, w2p, b2p, wihp, whhp, blp, wlabp, blabp)


def reference_forward(x, params):
    """Pure-JAX f32 reference (mirrors the PyTorch module, batched over sequences)."""
    (w1, b1, w2, b2, wih, whh, bl, wlab, blab) = params
    T, B = x.shape[0], x.shape[1]
    xf = x.reshape(T * B, IN_FEAT)
    h1 = jnp.maximum(xf @ w1 + b1, 0.0)
    fc = jnp.maximum(h1 @ w2 + b2, 0.0).reshape(T, B, FC2)

    def step(carry, xt):
        h, c = carry
        gates = xt @ wih + h @ whh + bl
        i = jax.nn.sigmoid(gates[:, 0 * HIDDEN:1 * HIDDEN])
        f = jax.nn.sigmoid(gates[:, 1 * HIDDEN:2 * HIDDEN])
        g = jnp.tanh(gates[:, 2 * HIDDEN:3 * HIDDEN])
        o = jax.nn.sigmoid(gates[:, 3 * HIDDEN:4 * HIDDEN])
        c = f * c + i * g
        h = o * jnp.tanh(c)
        return (h, c), None

    init = (jnp.zeros((B, HIDDEN), jnp.float32), jnp.zeros((B, HIDDEN), jnp.float32))
    (h_last, _), _ = lax.scan(step, init, fc)
    y = h_last @ wlab + blab
    return jax.nn.log_softmax(y, axis=-1)


if __name__ == "__main__":
    key = jax.random.PRNGKey(0)
    k_x, k_p = jax.random.split(key)

    T, B = 8, 16   # sequence length, number of independent sequences (module is B=1)
    x = jax.random.normal(k_x, (T, B, IN_FEAT), jnp.float32)   # (seq, batch, 75)
    params = init_params(k_p)
    prepared = prepare_params(params)

    out = lstm_classifier_forward(x, prepared)
    jax.block_until_ready(out)
    assert out.shape == (B, LABELS)

    ref = reference_forward(x, params)
    # Tolerance loosened vs. the pure-f32 version to cover bf16 MXU operands
    # (accumulation stays f32); still tight enough to catch gate-order/bias bugs.
    assert jnp.allclose(out, ref, atol=3e-2, rtol=3e-2), \
        float(jnp.max(jnp.abs(out - ref)))
    print("KERNEL_OK")
</pallas_src>

<mosaic_0001>
module attributes {stable_mosaic.version = 11 : i64} {
  func.func @lstm_classifier_kernel(%arg0: i32, %arg1: memref<1x64x128xf32, #tpu.memory_space<vmem>>, %arg2: memref<128x128xbf16, #tpu.memory_space<vmem>>, %arg3: memref<1x128xf32, #tpu.memory_space<vmem>>, %arg4: memref<128x128xbf16, #tpu.memory_space<vmem>>, %arg5: memref<1x128xf32, #tpu.memory_space<vmem>>, %arg6: memref<128x512xbf16, #tpu.memory_space<vmem>>, %arg7: memref<128x512xbf16, #tpu.memory_space<vmem>>, %arg8: memref<1x512xf32, #tpu.memory_space<vmem>>, %arg9: memref<128x128xbf16, #tpu.memory_space<vmem>>, %arg10: memref<1x128xf32, #tpu.memory_space<vmem>>, %arg11: memref<1x8x128xf32, #tpu.memory_space<vmem>>, %arg12: memref<64x512xf32, #tpu.memory_space<vmem>>) attributes {dimension_semantics = [#tpu.dimension_semantics<parallel>], iteration_bounds = array<i64: 2>, scalar_prefetch = 0 : i64, scratch_operands = 1 : i64, tpu.core_type = #tpu.core_type<tc>, window_params = [{transform_indices = @transform_0, window_bounds = array<i64: 1, 64, 128>}, {pipeline_mode = #tpu.pipeline_mode<synchronous>, transform_indices = @transform_1, window_bounds = array<i64: 128, 128>}, {pipeline_mode = #tpu.pipeline_mode<synchronous>, transform_indices = @transform_2, window_bounds = array<i64: 1, 128>}, {pipeline_mode = #tpu.pipeline_mode<synchronous>, transform_indices = @transform_3, window_bounds = array<i64: 128, 128>}, {pipeline_mode = #tpu.pipeline_mode<synchronous>, transform_indices = @transform_4, window_bounds = array<i64: 1, 128>}, {pipeline_mode = #tpu.pipeline_mode<synchronous>, transform_indices = @transform_5, window_bounds = array<i64: 128, 512>}, {pipeline_mode = #tpu.pipeline_mode<synchronous>, transform_indices = @transform_6, window_bounds = array<i64: 128, 512>}, {pipeline_mode = #tpu.pipeline_mode<synchronous>, transform_indices = @transform_7, window_bounds = array<i64: 1, 512>}, {pipeline_mode = #tpu.pipeline_mode<synchronous>, transform_indices = @transform_8, window_bounds = array<i64: 128, 128>}, {pipeline_mode = #tpu.pipeline_mode<synchronous>, transform_indices = @transform_9, window_bounds = array<i64: 1, 128>}, {transform_indices = @transform_10, window_bounds = array<i64: 1, 8, 128>}]} {
    %c0 = arith.constant 0 : index
    %c0_0 = arith.constant 0 : index
    %c0_1 = arith.constant 0 : index
    %0 = vector.load %arg1[%c0, %c0_0, %c0_1] : memref<1x64x128xf32, #tpu.memory_space<vmem>>, vector<1x64x128xf32>
    %1 = vector.shape_cast %0 : vector<1x64x128xf32> to vector<64x128xf32>
    %2 = arith.truncf %1 : vector<64x128xf32> to vector<64x128xbf16>
    %c0_2 = arith.constant 0 : index
    %c0_3 = arith.constant 0 : index
    %3 = vector.load %arg2[%c0_2, %c0_3] : memref<128x128xbf16, #tpu.memory_space<vmem>>, vector<128x128xbf16>
    %cst = arith.constant dense<0.000000e+00> : vector<64x128xf32>
    %4 = tpu.matmul %2, %3, %cst {dimension_numbers = #tpu.dot_dimension_numbers<[1], [0], [0], [1], [0, 0, 1, 1], [], []>} : vector<64x128xbf16>, vector<128x128xbf16>, vector<64x128xf32> -> vector<64x128xf32>
    %c0_4 = arith.constant 0 : index
    %c0_5 = arith.constant 0 : index
    %5 = vector.load %arg3[%c0_4, %c0_5] : memref<1x128xf32, #tpu.memory_space<vmem>>, vector<1x128xf32>
    %6 = vector.broadcast %5 : vector<1x128xf32> to vector<64x128xf32>
    %7 = arith.addf %4, %6 : vector<64x128xf32>
    %cst_6 = arith.constant 0.000000e+00 : f32
    %8 = vector.broadcast %cst_6 : f32 to vector<64x128xf32>
    %9 = arith.maximumf %7, %8 : vector<64x128xf32>
    %10 = arith.truncf %9 : vector<64x128xf32> to vector<64x128xbf16>
    %c0_7 = arith.constant 0 : index
    %c0_8 = arith.constant 0 : index
    %11 = vector.load %arg4[%c0_7, %c0_8] : memref<128x128xbf16, #tpu.memory_space<vmem>>, vector<128x128xbf16>
    %cst_9 = arith.constant dense<0.000000e+00> : vector<64x128xf32>
    %12 = tpu.matmul %10, %11, %cst_9 {dimension_numbers = #tpu.dot_dimension_numbers<[1], [0], [0], [1], [0, 0, 1, 1], [], []>} : vector<64x128xbf16>, vector<128x128xbf16>, vector<64x128xf32> -> vector<64x128xf32>
    %c0_10 = arith.constant 0 : index
    %c0_11 = arith.constant 0 : index
    %13 = vector.load %arg5[%c0_10, %c0_11] : memref<1x128xf32, #tpu.memory_space<vmem>>, vector<1x128xf32>
    %14 = vector.broadcast %13 : vector<1x128xf32> to vector<64x128xf32>
    %15 = arith.addf %12, %14 : vector<64x128xf32>
    %cst_12 = arith.constant 0.000000e+00 : f32
    %16 = vector.broadcast %cst_12 : f32 to vector<64x128xf32>
    %17 = arith.maximumf %15, %16 : vector<64x128xf32>
    %18 = arith.truncf %17 : vector<64x128xf32> to vector<64x128xbf16>
    %c0_13 = arith.constant 0 : index
    %c0_14 = arith.constant 0 : index
    %19 = vector.load %arg6[%c0_13, %c0_14] : memref<128x512xbf16, #tpu.memory_space<vmem>>, vector<128x512xbf16>
    %cst_15 = arith.constant dense<0.000000e+00> : vector<64x512xf32>
    %20 = tpu.matmul %18, %19, %cst_15 {dimension_numbers = #tpu.dot_dimension_numbers<[1], [0], [0], [1], [0, 0, 1, 1], [], []>} : vector<64x128xbf16>, vector<128x512xbf16>, vector<64x512xf32> -> vector<64x512xf32>
    %c0_16 = arith.constant 0 : index
    %c0_17 = arith.constant 0 : index
    %21 = vector.load %arg8[%c0_16, %c0_17] : memref<1x512xf32, #tpu.memory_space<vmem>>, vector<1x512xf32>
    %22 = vector.broadcast %21 : vector<1x512xf32> to vector<64x512xf32>
    %23 = arith.addf %20, %22 : vector<64x512xf32>
    %c0_18 = arith.constant 0 : index
    %c0_19 = arith.constant 0 : index
    %24 = vector.load %arg12[%c0_18, %c0_19] : memref<64x512xf32, #tpu.memory_space<vmem>>, vector<64x512xf32>
    tpu.vector_store %arg12[%c0_18, %c0_19], %23 {strides = array<i32>} : memref<64x512xf32, #tpu.memory_space<vmem>>, vector<64x512xf32>,
    %c0_20 = arith.constant 0 : index
    %c0_21 = arith.constant 0 : index
    %25 = vector.load %arg7[%c0_20, %c0_21] : memref<128x512xbf16, #tpu.memory_space<vmem>>, vector<128x512xbf16>
    %cst_22 = arith.constant 0.000000e+00 : f32
    %26 = vector.broadcast %cst_22 : f32 to vector<8x128xf32>
    %cst_23 = arith.constant 0.000000e+00 : f32
    %27 = vector.broadcast %cst_23 : f32 to vector<8x128xf32>
    %c0_i32 = arith.constant 0 : i32
    %c8_i32 = arith.constant 8 : i32
    %28 = arith.muli %c0_i32, %c8_i32 : i32
    %29 = tpu.assume_multiple %28, 8 : i32
    %30 = arith.index_cast %29 : i32 to index
    %c0_24 = arith.constant 0 : index
    %31 = vector.load %arg12[%30, %c0_24] : memref<64x512xf32, #tpu.memory_space<vmem>>, vector<8x512xf32>
    %32 = arith.truncf %26 : vector<8x128xf32> to vector<8x128xbf16>
    %cst_25 = arith.constant dense<0.000000e+00> : vector<8x512xf32>
    %33 = tpu.matmul %32, %25, %cst_25 {dimension_numbers = #tpu.dot_dimension_numbers<[1], [0], [0], [1], [0, 0, 1, 1], [], []>} : vector<8x128xbf16>, vector<128x512xbf16>, vector<8x512xf32> -> vector<8x512xf32>
    %34 = arith.addf %31, %33 : vector<8x512xf32>
    %35 = arith.negf %34 : vector<8x512xf32>
    %36 = math.exp %35 : vector<8x512xf32>
    %cst_26 = arith.constant 1.000000e+00 : f32
    %37 = vector.broadcast %cst_26 : f32 to vector<8x512xf32>
    %38 = arith.addf %37, %36 : vector<8x512xf32>
    %39 = arith.divf %37, %38 : vector<8x512xf32>
    %40 = vector.extract_strided_slice %39 {offsets = [0, 0], sizes = [8, 128], strides = [1, 1]} : vector<8x512xf32> to vector<8x128xf32>
    %41 = vector.extract_strided_slice %39 {offsets = [0, 128], sizes = [8, 128], strides = [1, 1]} : vector<8x512xf32> to vector<8x128xf32>
    %42 = vector.extract_strided_slice %39 {offsets = [0, 256], sizes = [8, 128], strides = [1, 1]} : vector<8x512xf32> to vector<8x128xf32>
    %cst_27 = arith.constant 2.000000e+00 : f32
    %43 = vector.broadcast %cst_27 : f32 to vector<8x128xf32>
    %44 = arith.mulf %43, %42 : vector<8x128xf32>
    %cst_28 = arith.constant 1.000000e+00 : f32
    %45 = vector.broadcast %cst_28 : f32 to vector<8x128xf32>
    %46 = arith.subf %44, %45 : vector<8x128xf32>
    %47 = vector.extract_strided_slice %39 {offsets = [0, 384], sizes = [8, 128], strides = [1, 1]} : vector<8x512xf32> to vector<8x128xf32>
    %48 = arith.mulf %41, %27 : vector<8x128xf32>
    %49 = arith.mulf %40, %46 : vector<8x128xf32>
    %50 = arith.addf %48, %49 : vector<8x128xf32>
    %51 = math.tanh %50 : vector<8x128xf32>
    %52 = arith.mulf %47, %51 : vector<8x128xf32>
    %c1_i32 = arith.constant 1 : i32
    %c8_i32_29 = arith.constant 8 : i32
    %53 = arith.muli %c1_i32, %c8_i32_29 : i32
    %54 = tpu.assume_multiple %53, 8 : i32
    %55 = arith.index_cast %54 : i32 to index
    %c0_30 = arith.constant 0 : index
    %56 = vector.load %arg12[%55, %c0_30] : memref<64x512xf32, #tpu.memory_space<vmem>>, vector<8x512xf32>
    %57 = arith.truncf %52 : vector<8x128xf32> to vector<8x128xbf16>
    %cst_31 = arith.constant dense<0.000000e+00> : vector<8x512xf32>
    %58 = tpu.matmul %57, %25, %cst_31 {dimension_numbers = #tpu.dot_dimension_numbers<[1], [0], [0], [1], [0, 0, 1, 1], [], []>} : vector<8x128xbf16>, vector<128x512xbf16>, vector<8x512xf32> -> vector<8x512xf32>
    %59 = arith.addf %56, %58 : vector<8x512xf32>
    %60 = arith.negf %59 : vector<8x512xf32>
    %61 = math.exp %60 : vector<8x512xf32>
    %cst_32 = arith.constant 1.000000e+00 : f32
    %62 = vector.broadcast %cst_32 : f32 to vector<8x512xf32>
    %63 = arith.addf %62, %61 : vector<8x512xf32>
    %64 = arith.divf %62, %63 : vector<8x512xf32>
    %65 = vector.extract_strided_slice %64 {offsets = [0, 0], sizes = [8, 128], strides = [1, 1]} : vector<8x512xf32> to vector<8x128xf32>
    %66 = vector.extract_strided_slice %64 {offsets = [0, 128], sizes = [8, 128], strides = [1, 1]} : vector<8x512xf32> to vector<8x128xf32>
    %67 = vector.extract_strided_slice %64 {offsets = [0, 256], sizes = [8, 128], strides = [1, 1]} : vector<8x512xf32> to vector<8x128xf32>
    %cst_33 = arith.constant 2.000000e+00 : f32
    %68 = vector.broadcast %cst_33 : f32 to vector<8x128xf32>
    %69 = arith.mulf %68, %67 : vector<8x128xf32>
    %cst_34 = arith.constant 1.000000e+00 : f32
    %70 = vector.broadcast %cst_34 : f32 to vector<8x128xf32>
    %71 = arith.subf %69, %70 : vector<8x128xf32>
    %72 = vector.extract_strided_slice %64 {offsets = [0, 384], sizes = [8, 128], strides = [1, 1]} : vector<8x512xf32> to vector<8x128xf32>
    %73 = arith.mulf %66, %50 : vector<8x128xf32>
    %74 = arith.mulf %65, %71 : vector<8x128xf32>
    %75 = arith.addf %73, %74 : vector<8x128xf32>
    %76 = math.tanh %75 : vector<8x128xf32>
    %77 = arith.mulf %72, %76 : vector<8x128xf32>
    %c2_i32 = arith.constant 2 : i32
    %c8_i32_35 = arith.constant 8 : i32
    %78 = arith.muli %c2_i32, %c8_i32_35 : i32
    %79 = tpu.assume_multiple %78, 8 : i32
    %80 = arith.index_cast %79 : i32 to index
    %c0_36 = arith.constant 0 : index
    %81 = vector.load %arg12[%80, %c0_36] : memref<64x512xf32, #tpu.memory_space<vmem>>, vector<8x512xf32>
    %82 = arith.truncf %77 : vector<8x128xf32> to vector<8x128xbf16>
    %cst_37 = arith.constant dense<0.000000e+00> : vector<8x512xf32>
    %83 = tpu.matmul %82, %25, %cst_37 {dimension_numbers = #tpu.dot_dimension_numbers<[1], [0], [0], [1], [0, 0, 1, 1], [], []>} : vector<8x128xbf16>, vector<128x512xbf16>, vector<8x512xf32> -> vector<8x512xf32>
    %84 = arith.addf %81, %83 : vector<8x512xf32>
    %85 = arith.negf %84 : vector<8x512xf32>
    %86 = math.exp %85 : vector<8x512xf32>
    %cst_38 = arith.constant 1.000000e+00 : f32
    %87 = vector.broadcast %cst_38 : f32 to vector<8x512xf32>
    %88 = arith.addf %87, %86 : vector<8x512xf32>
    %89 = arith.divf %87, %88 : vector<8x512xf32>
    %90 = vector.extract_strided_slice %89 {offsets = [0, 0], sizes = [8, 128], strides = [1, 1]} : vector<8x512xf32> to vector<8x128xf32>
    %91 = vector.extract_strided_slice %89 {offsets = [0, 128], sizes = [8, 128], strides = [1, 1]} : vector<8x512xf32> to vector<8x128xf32>
    %92 = vector.extract_strided_slice %89 {offsets = [0, 256], sizes = [8, 128], strides = [1, 1]} : vector<8x512xf32> to vector<8x128xf32>
    %cst_39 = arith.constant 2.000000e+00 : f32
    %93 = vector.broadcast %cst_39 : f32 to vector<8x128xf32>
    %94 = arith.mulf %93, %92 : vector<8x128xf32>
    %cst_40 = arith.constant 1.000000e+00 : f32
    %95 = vector.broadcast %cst_40 : f32 to vector<8x128xf32>
    %96 = arith.subf %94, %95 : vector<8x128xf32>
    %97 = vector.extract_strided_slice %89 {offsets = [0, 384], sizes = [8, 128], strides = [1, 1]} : vector<8x512xf32> to vector<8x128xf32>
    %98 = arith.mulf %91, %75 : vector<8x128xf32>
    %99 = arith.mulf %90, %96 : vector<8x128xf32>
    %100 = arith.addf %98, %99 : vector<8x128xf32>
    %101 = math.tanh %100 : vector<8x128xf32>
    %102 = arith.mulf %97, %101 : vector<8x128xf32>
    %c3_i32 = arith.constant 3 : i32
    %c8_i32_41 = arith.constant 8 : i32
    %103 = arith.muli %c3_i32, %c8_i32_41 : i32
    %104 = tpu.assume_multiple %103, 8 : i32
    %105 = arith.index_cast %104 : i32 to index
    %c0_42 = arith.constant 0 : index
    %106 = vector.load %arg12[%105, %c0_42] : memref<64x512xf32, #tpu.memory_space<vmem>>, vector<8x512xf32>
    %107 = arith.truncf %102 : vector<8x128xf32> to vector<8x128xbf16>
    %cst_43 = arith.constant dense<0.000000e+00> : vector<8x512xf32>
    %108 = tpu.matmul %107, %25, %cst_43 {dimension_numbers = #tpu.dot_dimension_numbers<[1], [0], [0], [1], [0, 0, 1, 1], [], []>} : vector<8x128xbf16>, vector<128x512xbf16>, vector<8x512xf32> -> vector<8x512xf32>
    %109 = arith.addf %106, %108 : vector<8x512xf32>
    %110 = arith.negf %109 : vector<8x512xf32>
    %111 = math.exp %110 : vector<8x512xf32>
    %cst_44 = arith.constant 1.000000e+00 : f32
    %112 = vector.broadcast %cst_44 : f32 to vector<8x512xf32>
    %113 = arith.addf %112, %111 : vector<8x512xf32>
    %114 = arith.divf %112, %113 : vector<8x512xf32>
    %115 = vector.extract_strided_slice %114 {offsets = [0, 0], sizes = [8, 128], strides = [1, 1]} : vector<8x512xf32> to vector<8x128xf32>
    %116 = vector.extract_strided_slice %114 {offsets = [0, 128], sizes = [8, 128], strides = [1, 1]} : vector<8x512xf32> to vector<8x128xf32>
    %117 = vector.extract_strided_slice %114 {offsets = [0, 256], sizes = [8, 128], strides = [1, 1]} : vector<8x512xf32> to vector<8x128xf32>
    %cst_45 = arith.constant 2.000000e+00 : f32
    %118 = vector.broadcast %cst_45 : f32 to vector<8x128xf32>
    %119 = arith.mulf %118, %117 : vector<8x128xf32>
    %cst_46 = arith.constant 1.000000e+00 : f32
    %120 = vector.broadcast %cst_46 : f32 to vector<8x128xf32>
    %121 = arith.subf %119, %120 : vector<8x128xf32>
    %122 = vector.extract_strided_slice %114 {offsets = [0, 384], sizes = [8, 128], strides = [1, 1]} : vector<8x512xf32> to vector<8x128xf32>
    %123 = arith.mulf %116, %100 : vector<8x128xf32>
    %124 = arith.mulf %115, %121 : vector<8x128xf32>
    %125 = arith.addf %123, %124 : vector<8x128xf32>
    %126 = math.tanh %125 : vector<8x128xf32>
    %127 = arith.mulf %122, %126 : vector<8x128xf32>
    %c4_i32 = arith.constant 4 : i32
    %c8_i32_47 = arith.constant 8 : i32
    %128 = arith.muli %c4_i32, %c8_i32_47 : i32
    %129 = tpu.assume_multiple %128, 8 : i32
    %130 = arith.index_cast %129 : i32 to index
    %c0_48 = arith.constant 0 : index
    %131 = vector.load %arg12[%130, %c0_48] : memref<64x512xf32, #tpu.memory_space<vmem>>, vector<8x512xf32>
    %132 = arith.truncf %127 : vector<8x128xf32> to vector<8x128xbf16>
    %cst_49 = arith.constant dense<0.000000e+00> : vector<8x512xf32>
    %133 = tpu.matmul %132, %25, %cst_49 {dimension_numbers = #tpu.dot_dimension_numbers<[1], [0], [0], [1], [0, 0, 1, 1], [], []>} : vector<8x128xbf16>, vector<128x512xbf16>, vector<8x512xf32> -> vector<8x512xf32>
    %134 = arith.addf %131, %133 : vector<8x512xf32>
    %135 = arith.negf %134 : vector<8x512xf32>
    %136 = math.exp %135 : vector<8x512xf32>
    %cst_50 = arith.constant 1.000000e+00 : f32
    %137 = vector.broadcast %cst_50 : f32 to vector<8x512xf32>
    %138 = arith.addf %137, %136 : vector<8x512xf32>
    %139 = arith.divf %137, %138 : vector<8x512xf32>
    %140 = vector.extract_strided_slice %139 {offsets = [0, 0], sizes = [8, 128], strides = [1, 1]} : vector<8x512xf32> to vector<8x128xf32>
    %141 = vector.extract_strided_slice %139 {offsets = [0, 128], sizes = [8, 128], strides = [1, 1]} : vector<8x512xf32> to vector<8x128xf32>
    %142 = vector.extract_strided_slice %139 {offsets = [0, 256], sizes = [8, 128], strides = [1, 1]} : vector<8x512xf32> to vector<8x128xf32>
    %cst_51 = arith.constant 2.000000e+00 : f32
    %143 = vector.broadcast %cst_51 : f32 to vector<8x128xf32>
    %144 = arith.mulf %143, %142 : vector<8x128xf32>
    %cst_52 = arith.constant 1.000000e+00 : f32
    %145 = vector.broadcast %cst_52 : f32 to vector<8x128xf32>
    %146 = arith.subf %144, %145 : vector<8x128xf32>
    %147 = vector.extract_strided_slice %139 {offsets = [0, 384], sizes = [8, 128], strides = [1, 1]} : vector<8x512xf32> to vector<8x128xf32>
    %148 = arith.mulf %141, %125 : vector<8x128xf32>
    %149 = arith.mulf %140, %146 : vector<8x128xf32>
    %150 = arith.addf %148, %149 : vector<8x128xf32>
    %151 = math.tanh %150 : vector<8x128xf32>
    %152 = arith.mulf %147, %151 : vector<8x128xf32>
    %c5_i32 = arith.constant 5 : i32
    %c8_i32_53 = arith.constant 8 : i32
    %153 = arith.muli %c5_i32, %c8_i32_53 : i32
    %154 = tpu.assume_multiple %153, 8 : i32
    %155 = arith.index_cast %154 : i32 to index
    %c0_54 = arith.constant 0 : index
    %156 = vector.load %arg12[%155, %c0_54] : memref<64x512xf32, #tpu.memory_space<vmem>>, vector<8x512xf32>
    %157 = arith.truncf %152 : vector<8x128xf32> to vector<8x128xbf16>
    %cst_55 = arith.constant dense<0.000000e+00> : vector<8x512xf32>
    %158 = tpu.matmul %157, %25, %cst_55 {dimension_numbers = #tpu.dot_dimension_numbers<[1], [0], [0], [1], [0, 0, 1, 1], [], []>} : vector<8x128xbf16>, vector<128x512xbf16>, vector<8x512xf32> -> vector<8x512xf32>
    %159 = arith.addf %156, %158 : vector<8x512xf32>
    %160 = arith.negf %159 : vector<8x512xf32>
    %161 = math.exp %160 : vector<8x512xf32>
    %cst_56 = arith.constant 1.000000e+00 : f32
    %162 = vector.broadcast %cst_56 : f32 to vector<8x512xf32>
    %163 = arith.addf %162, %161 : vector<8x512xf32>
    %164 = arith.divf %162, %163 : vector<8x512xf32>
    %165 = vector.extract_strided_slice %164 {offsets = [0, 0], sizes = [8, 128], strides = [1, 1]} : vector<8x512xf32> to vector<8x128xf32>
    %166 = vector.extract_strided_slice %164 {offsets = [0, 128], sizes = [8, 128], strides = [1, 1]} : vector<8x512xf32> to vector<8x128xf32>
    %167 = vector.extract_strided_slice %164 {offsets = [0, 256], sizes = [8, 128], strides = [1, 1]} : vector<8x512xf32> to vector<8x128xf32>
    %cst_57 = arith.constant 2.000000e+00 : f32
    %168 = vector.broadcast %cst_57 : f32 to vector<8x128xf32>
    %169 = arith.mulf %168, %167 : vector<8x128xf32>
    %cst_58 = arith.constant 1.000000e+00 : f32
    %170 = vector.broadcast %cst_58 : f32 to vector<8x128xf32>
    %171 = arith.subf %169, %170 : vector<8x128xf32>
    %172 = vector.extract_strided_slice %164 {offsets = [0, 384], sizes = [8, 128], strides = [1, 1]} : vector<8x512xf32> to vector<8x128xf32>
    %173 = arith.mulf %166, %150 : vector<8x128xf32>
    %174 = arith.mulf %165, %171 : vector<8x128xf32>
    %175 = arith.addf %173, %174 : vector<8x128xf32>
    %176 = math.tanh %175 : vector<8x128xf32>
    %177 = arith.mulf %172, %176 : vector<8x128xf32>
    %c6_i32 = arith.constant 6 : i32
    %c8_i32_59 = arith.constant 8 : i32
    %178 = arith.muli %c6_i32, %c8_i32_59 : i32
    %179 = tpu.assume_multiple %178, 8 : i32
    %180 = arith.index_cast %179 : i32 to index
    %c0_60 = arith.constant 0 : index
    %181 = vector.load %arg12[%180, %c0_60] : memref<64x512xf32, #tpu.memory_space<vmem>>, vector<8x512xf32>
    %182 = arith.truncf %177 : vector<8x128xf32> to vector<8x128xbf16>
    %cst_61 = arith.constant dense<0.000000e+00> : vector<8x512xf32>
    %183 = tpu.matmul %182, %25, %cst_61 {dimension_numbers = #tpu.dot_dimension_numbers<[1], [0], [0], [1], [0, 0, 1, 1], [], []>} : vector<8x128xbf16>, vector<128x512xbf16>, vector<8x512xf32> -> vector<8x512xf32>
    %184 = arith.addf %181, %183 : vector<8x512xf32>
    %185 = arith.negf %184 : vector<8x512xf32>
    %186 = math.exp %185 : vector<8x512xf32>
    %cst_62 = arith.constant 1.000000e+00 : f32
    %187 = vector.broadcast %cst_62 : f32 to vector<8x512xf32>
    %188 = arith.addf %187, %186 : vector<8x512xf32>
    %189 = arith.divf %187, %188 : vector<8x512xf32>
    %190 = vector.extract_strided_slice %189 {offsets = [0, 0], sizes = [8, 128], strides = [1, 1]} : vector<8x512xf32> to vector<8x128xf32>
    %191 = vector.extract_strided_slice %189 {offsets = [0, 128], sizes = [8, 128], strides = [1, 1]} : vector<8x512xf32> to vector<8x128xf32>
    %192 = vector.extract_strided_slice %189 {offsets = [0, 256], sizes = [8, 128], strides = [1, 1]} : vector<8x512xf32> to vector<8x128xf32>
    %cst_63 = arith.constant 2.000000e+00 : f32
    %193 = vector.broadcast %cst_63 : f32 to vector<8x128xf32>
    %194 = arith.mulf %193, %192 : vector<8x128xf32>
    %cst_64 = arith.constant 1.000000e+00 : f32
    %195 = vector.broadcast %cst_64 : f32 to vector<8x128xf32>
    %196 = arith.subf %194, %195 : vector<8x128xf32>
    %197 = vector.extract_strided_slice %189 {offsets = [0, 384], sizes = [8, 128], strides = [1, 1]} : vector<8x512xf32> to vector<8x128xf32>
    %198 = arith.mulf %191, %175 : vector<8x128xf32>
    %199 = arith.mulf %190, %196 : vector<8x128xf32>
    %200 = arith.addf %198, %199 : vector<8x128xf32>
    %201 = math.tanh %200 : vector<8x128xf32>
    %202 = arith.mulf %197, %201 : vector<8x128xf32>
    %c7_i32 = arith.constant 7 : i32
    %c8_i32_65 = arith.constant 8 : i32
    %203 = arith.muli %c7_i32, %c8_i32_65 : i32
    %204 = tpu.assume_multiple %203, 8 : i32
    %205 = arith.index_cast %204 : i32 to index
    %c0_66 = arith.constant 0 : index
    %206 = vector.load %arg12[%205, %c0_66] : memref<64x512xf32, #tpu.memory_space<vmem>>, vector<8x512xf32>
    %207 = arith.truncf %202 : vector<8x128xf32> to vector<8x128xbf16>
    %cst_67 = arith.constant dense<0.000000e+00> : vector<8x512xf32>
    %208 = tpu.matmul %207, %25, %cst_67 {dimension_numbers = #tpu.dot_dimension_numbers<[1], [0], [0], [1], [0, 0, 1, 1], [], []>} : vector<8x128xbf16>, vector<128x512xbf16>, vector<8x512xf32> -> vector<8x512xf32>
    %209 = arith.addf %206, %208 : vector<8x512xf32>
    %210 = arith.negf %209 : vector<8x512xf32>
    %211 = math.exp %210 : vector<8x512xf32>
    %cst_68 = arith.constant 1.000000e+00 : f32
    %212 = vector.broadcast %cst_68 : f32 to vector<8x512xf32>
    %213 = arith.addf %212, %211 : vector<8x512xf32>
    %214 = arith.divf %212, %213 : vector<8x512xf32>
    %215 = vector.extract_strided_slice %214 {offsets = [0, 0], sizes = [8, 128], strides = [1, 1]} : vector<8x512xf32> to vector<8x128xf32>
    %216 = vector.extract_strided_slice %214 {offsets = [0, 128], sizes = [8, 128], strides = [1, 1]} : vector<8x512xf32> to vector<8x128xf32>
    %217 = vector.extract_strided_slice %214 {offsets = [0, 256], sizes = [8, 128], strides = [1, 1]} : vector<8x512xf32> to vector<8x128xf32>
    %cst_69 = arith.constant 2.000000e+00 : f32
    %218 = vector.broadcast %cst_69 : f32 to vector<8x128xf32>
    %219 = arith.mulf %218, %217 : vector<8x128xf32>
    %cst_70 = arith.constant 1.000000e+00 : f32
    %220 = vector.broadcast %cst_70 : f32 to vector<8x128xf32>
    %221 = arith.subf %219, %220 : vector<8x128xf32>
    %222 = vector.extract_strided_slice %214 {offsets = [0, 384], sizes = [8, 128], strides = [1, 1]} : vector<8x512xf32> to vector<8x128xf32>
    %223 = arith.mulf %216, %200 : vector<8x128xf32>
    %224 = arith.mulf %215, %221 : vector<8x128xf32>
    %225 = arith.addf %223, %224 : vector<8x128xf32>
    %226 = math.tanh %225 : vector<8x128xf32>
    %227 = arith.mulf %222, %226 : vector<8x128xf32>
    %c8_i32_71 = arith.constant 8 : i32
    %228 = arith.truncf %227 : vector<8x128xf32> to vector<8x128xbf16>
    %c0_72 = arith.constant 0 : index
    %c0_73 = arith.constant 0 : index
    %229 = vector.load %arg9[%c0_72, %c0_73] : memref<128x128xbf16, #tpu.memory_space<vmem>>, vector<128x128xbf16>
    %cst_74 = arith.constant dense<0.000000e+00> : vector<8x128xf32>
    %230 = tpu.matmul %228, %229, %cst_74 {dimension_numbers = #tpu.dot_dimension_numbers<[1], [0], [0], [1], [0, 0, 1, 1], [], []>} : vector<8x128xbf16>, vector<128x128xbf16>, vector<8x128xf32> -> vector<8x128xf32>
    %c0_75 = arith.constant 0 : index
    %c0_76 = arith.constant 0 : index
    %231 = vector.load %arg10[%c0_75, %c0_76] : memref<1x128xf32, #tpu.memory_space<vmem>>, vector<1x128xf32>
    %232 = vector.broadcast %231 : vector<1x128xf32> to vector<8x128xf32>
    %233 = arith.addf %230, %232 : vector<8x128xf32>
    %cst_77 = arith.constant dense<0xFF800000> : vector<8xf32>
    %234 = vector.multi_reduction <maximumf>, %233, %cst_77 [1] : vector<8x128xf32> to vector<8xf32>
    %235 = vector.shape_cast %234 : vector<8xf32> to vector<8x1xf32>
    %236 = vector.broadcast %235 : vector<8x1xf32> to vector<8x128xf32>
    %237 = arith.subf %233, %236 : vector<8x128xf32>
    %238 = math.exp %237 : vector<8x128xf32>
    %cst_78 = arith.constant dense<0.000000e+00> : vector<8xf32>
    %239 = vector.multi_reduction <add>, %238, %cst_78 [1] : vector<8x128xf32> to vector<8xf32>
    %240 = vector.shape_cast %239 : vector<8xf32> to vector<8x1xf32>
    %241 = math.log %240 : vector<8x1xf32>
    %242 = vector.broadcast %241 : vector<8x1xf32> to vector<8x128xf32>
    %243 = arith.subf %237, %242 : vector<8x128xf32>
    %244 = vector.shape_cast %243 : vector<8x128xf32> to vector<1x8x128xf32>
    %c0_79 = arith.constant 0 : index
    %c0_80 = arith.constant 0 : index
    %c0_81 = arith.constant 0 : index
    %245 = vector.load %arg11[%c0_79, %c0_80, %c0_81] : memref<1x8x128xf32, #tpu.memory_space<vmem>>, vector<1x8x128xf32>
    tpu.vector_store %arg11[%c0_79, %c0_80, %c0_81], %244 {strides = array<i32>} : memref<1x8x128xf32, #tpu.memory_space<vmem>>, vector<1x8x128xf32>,
    return
  }
  func.func @transform_0(%arg0: i32) -> (i32, i32, i32) {
    %c0_i32 = arith.constant 0 : i32
    %c0_i32_0 = arith.constant 0 : i32
    %c0_i32_1 = arith.constant 0 : i32
    return %arg0, %c0_i32, %c0_i32_0 : i32, i32, i32
  }
  func.func @transform_1(%arg0: i32) -> (i32, i32) {
    %c0_i32 = arith.constant 0 : i32
    %c0_i32_0 = arith.constant 0 : i32
    %c0_i32_1 = arith.constant 0 : i32
    return %c0_i32, %c0_i32_0 : i32, i32
  }
  func.func @transform_2(%arg0: i32) -> (i32, i32) {
    %c0_i32 = arith.constant 0 : i32
    %c0_i32_0 = arith.constant 0 : i32
    %c0_i32_1 = arith.constant 0 : i32
    return %c0_i32, %c0_i32_0 : i32, i32
  }
  func.func @transform_3(%arg0: i32) -> (i32, i32) {
    %c0_i32 = arith.constant 0 : i32
    %c0_i32_0 = arith.constant 0 : i32
    %c0_i32_1 = arith.constant 0 : i32
    return %c0_i32, %c0_i32_0 : i32, i32
  }
  func.func @transform_4(%arg0: i32) -> (i32, i32) {
    %c0_i32 = arith.constant 0 : i32
    %c0_i32_0 = arith.constant 0 : i32
    %c0_i32_1 = arith.constant 0 : i32
    return %c0_i32, %c0_i32_0 : i32, i32
  }
  func.func @transform_5(%arg0: i32) -> (i32, i32) {
    %c0_i32 = arith.constant 0 : i32
    %c0_i32_0 = arith.constant 0 : i32
    %c0_i32_1 = arith.constant 0 : i32
    return %c0_i32, %c0_i32_0 : i32, i32
  }
  func.func @transform_6(%arg0: i32) -> (i32, i32) {
    %c0_i32 = arith.constant 0 : i32
    %c0_i32_0 = arith.constant 0 : i32
    %c0_i32_1 = arith.constant 0 : i32
    return %c0_i32, %c0_i32_0 : i32, i32
  }
  func.func @transform_7(%arg0: i32) -> (i32, i32) {
    %c0_i32 = arith.constant 0 : i32
    %c0_i32_0 = arith.constant 0 : i32
    %c0_i32_1 = arith.constant 0 : i32
    return %c0_i32, %c0_i32_0 : i32, i32
  }
  func.func @transform_8(%arg0: i32) -> (i32, i32) {
    %c0_i32 = arith.constant 0 : i32
    %c0_i32_0 = arith.constant 0 : i32
    %c0_i32_1 = arith.constant 0 : i32
    return %c0_i32, %c0_i32_0 : i32, i32
  }
  func.func @transform_9(%arg0: i32) -> (i32, i32) {
    %c0_i32 = arith.constant 0 : i32
    %c0_i32_0 = arith.constant 0 : i32
    %c0_i32_1 = arith.constant 0 : i32
    return %c0_i32, %c0_i32_0 : i32, i32
  }
  func.func @transform_10(%arg0: i32) -> (i32, i32, i32) {
    %c0_i32 = arith.constant 0 : i32
    %c0_i32_0 = arith.constant 0 : i32
    %c0_i32_1 = arith.constant 0 : i32
    return %arg0, %c0_i32, %c0_i32_0 : i32, i32, i32
  }
}

</mosaic_0001>

<bundles_post_ra>
// kernel: tpu_custom_call.1
= control target key start
LH: loop header
LB: loop body
LE: loop exit
PB: predicated region body
PF: predicated region fallthrough
CT: control target
= control target key end

     0   :  { %s4449_s0 = inlined_call_operand.hbm [shape: f32[2,64,128], index: 0, kind: input, shape index: {}]   ;;  %s4450_s1 = inlined_call_operand.hbm [shape: bf16[128,128], index: 1, kind: input, shape index: {}]   ;;  %s4451_s2 = inlined_call_operand.vmem [shape: f32[1,128], index: 2, kind: input, shape index: {}]   ;;  %s4452_s3 = inlined_call_operand.hbm [shape: bf16[128,128], index: 3, kind: input, shape index: {}]   ;;  %s4453_s4 = inlined_call_operand.vmem [shape: f32[1,128], index: 4, kind: input, shape index: {}]   ;;  %s4454_s5 = inlined_call_operand.hbm [shape: bf16[128,512], index: 5, kind: input, shape index: {}]   ;;  %s4455_s6 = inlined_call_operand.hbm [shape: bf16[128,512], index: 6, kind: input, shape index: {}]   ;;  %s4456_s7 = inlined_call_operand.vmem [shape: f32[1,512], index: 7, kind: input, shape index: {}]   ;;  %s4457_s8 = inlined_call_operand.hbm [shape: bf16[128,128], index: 8, kind: input, shape index: {}]   ;;  %s4458_s9 = inlined_call_operand.vmem [shape: f32[1,128], index: 9, kind: input, shape index: {}]   ;;  %s4459_s10 = inlined_call_operand.hbm [shape: f32[2,8,128], index: 10, kind: output, shape index: {}]  }
   0x1   :  { %4470 = sst [smem:[#allocation43_spill]] %s4450_s1 }
   0x2   :  { %4471 = sst [smem:[#allocation44_spill]] %s4458_s9 }
   0x3   :  { %4472 = sst [smem:[#allocation45_spill]] %s4459_s10 }
   0x4   :  { %15 = vsyncpa [#allocation4], 0 }
   0x5   :  { %17 = vsyncpa [#allocation4 + $0x1], 0 }
   0x6   :  { %18 = vsyncpa [#allocation7], 0 }
   0x7   :  { %19 = vsyncpa [#allocation10], 0 }
   0x8   :  { %20 = vsyncpa [#allocation13], 0 }
   0x9   :  { %21 = vsyncpa [#allocation5], 0 }
   0xa   :  { %23 = vsyncpa [#allocation5 + $0x1], 0  ;;  %s3588_s13 = smov 0   ;;  %s3590_s14 = smov 0  }
   0xb   :  { %s3592_s15 = smov 0   ;;  %s3594_s16 = smov 0  }
   0xc LB: > { %s3517_s17 = smov [#allocation6]   ;;  %s3609_s19 = sadd.s32 4294967295, %s3515_s16   ;;  %s3515_s16 = sphi %s3594_s16, %s4547_s16   ;;  %s3511_s15 = sphi %s3592_s15, %s4546_s15   ;;  %s3507_s14 = sphi %s3590_s14, %s4545_s14   ;;  %s3503_s13 = sphi %s3588_s13, %s4544_s13  }
   0xd   : > { %s287_s18 = sshll.u32 %s3517_s17, 4  ;;  %p2606_p0 = scmp.ge.s32.totalorder %s3515_s16, 1  ;;  %s3614_s18 = int_to_ptr.vmem [resolvable:$true] %s287_s18 }
   0xe   : > { %p4463_p1 = scmp.eq.s32.totalorder %s3609_s19, 0  ;;  %p275_p2 = scmp.lt.s32.totalorder %s3515_s16, 3 }
   0xf   : > { %s3518_s21 = smov [#allocation9]   ;;  %s3519_s24 = smov [#allocation8]  }
  0x10   : > { %p3616_p3 = pnand %p2606_p0, %p275_p2  ;;  %s319_s22 = sshll.u32 %s3518_s21, 4  ;;  %s3629_s22 = int_to_ptr.vmem [resolvable:$true] %s319_s22 }
  0x11   : > { %s3631_s25 = sshll.u32 %s3519_s24, 4  ;;  %s4475_s1 = sld [smem:[#allocation43_spill]]  ;;  %s304_s25 = int_to_ptr.vmem [resolvable:$true] %s3631_s25 }
  0x12   : > { %s4473_s20 = scalar_select %p3616_p3, 1, 0 }
  0x13   : > { %p2885_p5 = pneg %p3616_p3 }
  0x15   : > { %p3625_p6 = pnand %p2885_p5, %p4463_p1 }
  0x17   : > { %s3267_s28 = scalar_lea.hbm %s4475_s1, 1024  ;;  %p3641_p8 = pneg %p3625_p6 }
  0x18   : > { %p3268_p7 = scmp.ne.s32.totalorder %s4475_s1, %s3267_s28  ;;  %p3274_p11 = scmp.lt.u32.totalorder %s3267_s28, %s4475_s1 }
  0x1a   : > { %p3270_p9 = pnand %p3641_p8, %p3268_p7 }
  0x1c   : > { %p3271_p10 = pneg %p3270_p9 }
  0x1e   : > { %p3276_p12 = pnand %p3274_p11, %p3271_p10 }
  0x20   : > { %3279 = shalt.err (!%p3276_p12)
}
  0x21   : > { %s3280_s21 = scalar_lea.vmem %s3614_s18, 1024  ;;  %p3288_p5 = scmp.lt.s32.totalorder %s3614_s18, %s3614_s18 }
  0x22   : > { %p3281_p13 = scmp.ne.s32.totalorder %s3614_s18, %s3280_s21  ;;  %p3289_p4 = scmp.lt.s32.totalorder %s3280_s21, %s3280_s21 }
  0x24   : > { %p3283_p0 = pnand %p3281_p13, %p3641_p8  ;;  %p3290_p7 = por %p3289_p4, %p3288_p5 }
  0x26   : > { %p3284_p2 = pneg %p3283_p0 }
  0x28   : > { %p3291_p9 = pnand %p3290_p7, %p3284_p2 }
  0x2a   : > { %3294 = shalt.err (!%p3291_p9)
}
  0x2b   : > { %s4461_s24 = smov 64   ;;  %s3521_s26 = smov 4  }
  0x2c   : > { %2888 = dma.hbm_to_vmem [thread:$0]  (!%p3625_p6), %s4475_s1, 1024, %s3614_s18, [#allocation7], %s4461_s24, %s4461_s24, %s3521_s26  }
  0x2d   : > { %s3295_s12 = scalar_lea.hbm %s4454_s5, 4096 }
  0x2e   : > { %p3296_p4 = scmp.ne.s32.totalorder %s4454_s5, %s3295_s12  ;;  %p3302_p12 = scmp.lt.u32.totalorder %s3295_s12, %s4454_s5 }
  0x30   : > { %p3298_p10 = pnand %p3296_p4, %p3641_p8 }
  0x32   : > { %p3299_p11 = pneg %p3298_p10 }
  0x34   : > { %p3304_p13 = pnand %p3302_p12, %p3299_p11 }
  0x36   : > { %3307 = shalt.err (!%p3304_p13)
}
  0x37   : > { %s3308_s18 = scalar_lea.vmem %s3629_s22, 4096  ;;  %p3316_p7 = scmp.lt.s32.totalorder %s3629_s22, %s3629_s22 }
  0x38   : > { %p3309_p0 = scmp.ne.s32.totalorder %s3629_s22, %s3308_s18  ;;  %p3317_p9 = scmp.lt.s32.totalorder %s3308_s18, %s3308_s18 }
  0x3a   : > { %p3311_p2 = pnand %p3309_p0, %p3641_p8  ;;  %p3318_p4 = por %p3317_p9, %p3316_p7 }
  0x3c   : > { %p3312_p5 = pneg %p3311_p2 }
  0x3e   : > { %p3319_p10 = pnand %p3318_p4, %p3312_p5 }
  0x40   : > { %3322 = shalt.err (!%p3319_p10)
}
  0x41   : > { %s4465_s27 = smov 256   ;;  %s4466_s9 = smov 16  }
  0x42   : > { %2894 = dma.hbm_to_vmem [thread:$0]  (!%p3625_p6), %s4454_s5, 4096, %s3629_s22, [#allocation10], %s4465_s27, %s4465_s27, %s4466_s9  }
  0x43   : > { %s3323_s12 = scalar_lea.hbm %s4452_s3, 1024 }
  0x44   : > { %p3324_p11 = scmp.ne.s32.totalorder %s4452_s3, %s3323_s12  ;;  %p3330_p0 = scmp.lt.u32.totalorder %s3323_s12, %s4452_s3 }
  0x46   : > { %p3326_p12 = pnand %p3324_p11, %p3641_p8 }
  0x48   : > { %p3327_p13 = pneg %p3326_p12 }
  0x4a   : > { %p3332_p2 = pnand %p3330_p0, %p3327_p13 }
  0x4c   : > { %3335 = shalt.err (!%p3332_p2)
}
  0x4d   : > { %s3336_s10 = scalar_lea.vmem %s304_s25, 1024  ;;  %p3344_p4 = scmp.lt.s32.totalorder %s304_s25, %s304_s25 }
  0x4e   : > { %p3337_p5 = scmp.ne.s32.totalorder %s304_s25, %s3336_s10  ;;  %p3345_p10 = scmp.lt.s32.totalorder %s3336_s10, %s3336_s10 }
  0x50   : > { %p3339_p7 = pnand %p3337_p5, %p3641_p8  ;;  %p3346_p1 = por %p3345_p10, %p3344_p4 }
  0x52   : > { %p3340_p9 = pneg %p3339_p7 }
  0x54   : > { %p3347_p3 = pnand %p3346_p1, %p3340_p9 }
  0x56   : > { %3350 = shalt.err (!%p3347_p3)
}
  0x57   : > { %s4477_s22 = smov 64   ;;  %s3524_s29 = smov [#allocation11]  }
  0x58   : > { %2891 = dma.hbm_to_vmem [thread:$0]  (!%p3625_p6), %s4452_s3, 1024, %s304_s25, [#allocation7], %s4477_s22, %s4477_s22, %s3521_s26  }
  0x59   : > { %s332_s30 = sshll.u32 %s3524_s29, 4  ;;  %s3525_s12 = smov [#allocation12]   ;;  %s333_s30 = int_to_ptr.vmem [resolvable:$true] %s332_s30 }
  0x5a   : > { %s348_s17 = sshll.u32 %s3525_s12, 4  ;;  %s3351_s10 = scalar_lea.hbm %s4455_s6, 4096  ;;  %s349_s17 = int_to_ptr.vmem [resolvable:$true] %s348_s17 }
  0x5b   : > { %p3352_p1 = scmp.ne.s32.totalorder %s4455_s6, %s3351_s10  ;;  %p3358_p12 = scmp.lt.u32.totalorder %s3351_s10, %s4455_s6 }
  0x5d   : > { %p3354_p3 = pnand %p3352_p1, %p3641_p8 }
  0x5f   : > { %p3355_p11 = pneg %p3354_p3 }
  0x61   : > { %p3360_p13 = pnand %p3358_p12, %p3355_p11 }
  0x63   : > { %3363 = shalt.err (!%p3360_p13)
}
  0x64   : > { %s3364_s25 = scalar_lea.vmem %s333_s30, 4096  ;;  %p3372_p7 = scmp.lt.s32.totalorder %s333_s30, %s333_s30 }
  0x65   : > { %p3365_p0 = scmp.ne.s32.totalorder %s333_s30, %s3364_s25  ;;  %p3373_p9 = scmp.lt.s32.totalorder %s3364_s25, %s3364_s25 }
  0x67   : > { %p3367_p2 = pnand %p3365_p0, %p3641_p8  ;;  %p3374_p4 = por %p3373_p9, %p3372_p7 }
  0x69   : > { %p3368_p5 = pneg %p3367_p2 }
  0x6b   : > { %p3375_p10 = pnand %p3374_p4, %p3368_p5 }
  0x6d   : > { %3378 = shalt.err (!%p3375_p10)
}
  0x6e   : > { %s4478_s27 = smov 16   ;;  %s4479_s9 = smov 256  }
  0x6f   : > { %2897 = dma.hbm_to_vmem [thread:$0]  (!%p3625_p6), %s4455_s6, 4096, %s333_s30, [#allocation10], %s4479_s9, %s4479_s9, %s4478_s27  }
  0x70   : > { %s3379_s21 = scalar_lea.hbm %s4457_s8, 1024 }
  0x71   : > { %p3380_p1 = scmp.ne.s32.totalorder %s4457_s8, %s3379_s21  ;;  %p3386_p12 = scmp.lt.u32.totalorder %s3379_s21, %s4457_s8 }
  0x73   : > { %p3382_p3 = pnand %p3380_p1, %p3641_p8 }
  0x75   : > { %p3383_p11 = pneg %p3382_p3 }
  0x77   : > { %p3388_p13 = pnand %p3386_p12, %p3383_p11 }
  0x79   : > { %3391 = shalt.err (!%p3388_p13)
}
  0x7a   : > { %s3392_s1 = scalar_lea.vmem %s349_s17, 1024  ;;  %p3400_p7 = scmp.lt.s32.totalorder %s349_s17, %s349_s17 }
  0x7b   : > { %p3393_p0 = scmp.ne.s32.totalorder %s349_s17, %s3392_s1  ;;  %p3401_p9 = scmp.lt.s32.totalorder %s3392_s1, %s3392_s1 }
  0x7d   : > { %p3395_p2 = pnand %p3393_p0, %p3641_p8  ;;  %p3402_p4 = por %p3401_p9, %p3400_p7 }
  0x7f   : > { %p3396_p5 = pneg %p3395_p2 }
  0x81   : > { %p3403_p10 = pnand %p3402_p4, %p3396_p5 }
  0x83   : > { %3406 = shalt.err (!%p3403_p10)
}
  0x84   : > { %2900 = dma.hbm_to_vmem [thread:$0]  (!%p3625_p6), %s4457_s8, 1024, %s349_s17, [#allocation13], %s4477_s22, %s4477_s22, %s3521_s26  }
  0x85   : > { %s2605_s23 = sadd.s32 4294967294, %s3515_s16   ;;  %s3757_s11 = sadd.s32 1, %s3515_s16  }
  0x86   : > { %s36_s9 = sadd.s32 1, %s3511_s15  ;;  %s33_s28 = ssub.s32 %s3515_s16, %s3757_s11 }
  0x87   : > { %p43_p8 = scmp.ne.s32.totalorder %s3511_s15, %s3507_s14  ;;  %p34_p1 = scmp.eq.s32.totalorder %s33_s28, 0 }
  0x88   : > { %p44_p3 = scmp.eq.s32.totalorder %s3515_s16, 0  ;;  %p49_p11 = scmp.ne.s32.totalorder %s3507_s14, %s3503_s13 }
  0x89   : > { %p262_p12 = scmp.eq.s32.totalorder %s3609_s19, 1  ;;  %p4480_p0 = scmp.eq.s32.totalorder %s3609_s19, 0 }
  0x8a   : > { %s3769_s29 = scalar_select %p34_p1, %s3511_s15, %s36_s9  }
  0x8b   : > { %p45_p13 = por %p44_p3, %p43_p8  ;;  %p3773_p2 = por %p4480_p0, %p49_p11 }
  0x8c   : > { %p3777_p6 = por %p262_p12, %p43_p8  ;;  %p268_p5 = scmp.eq.s32.totalorder %s2605_s23, 1 }
  0x8d   : > { %p2914_p7 = scmp.lt.s32.totalorder %s3515_s16, 2  ;;  %s365_s22 = sand.u32 1, %s3511_s15  }
  0x8e   : > { %s4482_s26 = scalar_select %p3777_p6, 1, 0 }
  0x8f   : > { %p3783_p9 = por %p268_p5, %p49_p11  ;;  %s2613_s21 = sshll.u32 %s365_s22, 6 }
  0x90   : > { %s2759_s18 = sshll.u32 %s3515_s16, 10  ;;  %s369_s1 = scalar_lea.vmem [#allocation3], %s2613_s21 }
  0x91   : > { %s4483_s17 = scalar_select %p3783_p9, 1, 0 }
  0x92   : > { %s3791_s25 = scalar_lea.hbm %s4449_s0, %s2759_s18  ;;  %s376_s30 = sshll.u32 %s369_s1, 4  ;;  %s3797_s30 = int_to_ptr.vmem [resolvable:$true] %s376_s30 }
  0x93   : > { %p3793_p4 = pnand %p2914_p7, %p45_p13  ;;  %s3799_s23 = scalar_lea.sflag [#allocation4], %s365_s22 }
  0x94   : > { %s3407_s9 = scalar_lea.hbm %s3791_s25, 1024  ;;  %s3412_s18 = scalar_lea.hbm %s4449_s0, 2048 }
  0x95   : > { %p3408_p10 = scmp.ne.s32.totalorder %s3791_s25, %s3407_s9  ;;  %p3409_p8 = pneg %p3793_p4 }
  0x96   : > { %p3413_p11 = scmp.lt.u32.totalorder %s3791_s25, %s4449_s0  ;;  %p3414_p12 = scmp.lt.u32.totalorder %s3412_s18, %s3407_s9 }
  0x97   : > { %p3410_p1 = pnand %p3409_p8, %p3408_p10  ;;  %p3416_p0 = scmp.lt.u32.totalorder %s3407_s9, %s3791_s25 }
  0x98   : > { %p3415_p13 = por %p3414_p12, %p3413_p11 }
  0x99   : > { %p3411_p3 = pneg %p3410_p1 }
  0x9a   : > { %p3417_p5 = por %p3416_p0, %p3415_p13 }
  0x9c   : > { %p3418_p7 = pnand %p3417_p5, %p3411_p3 }
  0x9e   : > { %3421 = shalt.err (!%p3418_p7)
}
  0x9f   : > { %s3422_s22 = scalar_lea.vmem %s3797_s30, 1024  ;;  %s3526_s1 = smov [#allocation3]  }
  0xa0   : > { %p3423_p10 = scmp.ne.s32.totalorder %s3797_s30, %s3422_s22  ;;  %s3427_s28 = sshll.u32 %s3526_s1, 4  ;;  %s3428_s28 = int_to_ptr.vmem [resolvable:$false] %s3427_s28 }
  0xa1   : > { %s3429_s21 = scalar_lea.vmem %s3428_s28, 2048  ;;  %p3430_p6 = scmp.lt.s32.totalorder %s3797_s30, %s3428_s28 }
  0xa2   : > { %p3425_p1 = pnand %p3423_p10, %p3409_p8  ;;  %p3431_p11 = scmp.lt.s32.totalorder %s3429_s21, %s3422_s22 }
  0xa4   : > { %p3426_p9 = pneg %p3425_p1  ;;  %p3432_p12 = por %p3431_p11, %p3430_p6 }
  0xa6   : > { %p3433_p13 = pnand %p3432_p12, %p3426_p9 }
  0xa8   : > { %3436 = shalt.err (!%p3433_p13)
}
  0xa9   : > { %s3527_s9 = smov 128   ;;  %s3528_s18 = smov 8  }
  0xaa   : > { %2904 = dma.hbm_to_vmem [thread:$0]  (!%p3793_p4), %s3791_s25, 1024, %s3797_s30, %s3799_s23, %s3527_s9, %s3527_s9, %s3528_s18  }
  0xab   : > { %p4485_p8 = scmp.ne.s32.totalorder %s4473_s20, 0 }
  0xad   : > { %388 = sbr.rel (%p4485_p8) target bundleno = 3356 (0xd1c), region = 60 }
  0xb4   : > { %s3830_s10 = sand.u32 1, %s3507_s14  }
  0xb5   : > { %s2617_s24 = sshll.u32 %s3830_s10, 6  ;;  %s391_s22 = scalar_lea.sflag [#allocation4], %s3830_s10 }
  0xb6   : > { %s3834_s1 = scalar_lea.vmem [#allocation3], %s2617_s24 }
  0xb7   : > { %3482 = dma.done.wait (%p3773_p2), %s391_s22, 1024  }
  0xb8   : > { %3484 = vsyncadd (%p3773_p2), %s391_s22, 4294966272  ;;  %p4486_p6 = scmp.eq.s32.totalorder %s3609_s19, 0 }
  0xba   : > { %3486 = dma.done.wait (%p4486_p6), [#allocation7], 2048   ;;  %p4487_p9 = pmov %p4486_p6 }
  0xbb   : > { %p4488_p4 = pmov %p4486_p6 }
  0xbc   : > { %3488 = vsyncadd (%p4487_p9), [#allocation7], 4294965248 }
  0xbd   : > { %3490 = dma.done.wait (%p4488_p4), [#allocation10], 8192   ;;  %p4489_p3 = pmov %p4488_p4 }
  0xbf   : > { %3492 = vsyncadd (%p4489_p3), [#allocation10], 4294959104  ;;  %p4490_p0 = pmov %p4489_p3 }
  0xc1   : > { %3494 = dma.done.wait (%p4490_p0), [#allocation13], 1024   ;;  %p4491_p5 = pmov %p4490_p0 }
  0xc2   : > { %v2967_v0 = vld [vmem:[#allocation6] sm:$0xff]   ;;  %v2968_v1 = vld [vmem:[#allocation6 + $0x8] sm:$0xff]   ;;  %v2969_v2 = vld [vmem:[#allocation6 + $0x10] sm:$0xff]   ;;  %vm3531_vm0 = vmmov 0   ;;  %s4539_s9 = sld [smem:[#allocation44_spill]]  ;;  %s2623_s18 = sshll.u32 %s3830_s10, 3 }
  0xc3   : > { %3496 = vsyncadd (%p4491_p5), [#allocation13], 4294966272  ;;  %2793 = vmatprep.subr.bf16.mxu0 %v2967_v0  ;;  %v2970_v3 = vld [vmem:[#allocation6 + $0x18] sm:$0xff]   ;;  %v452_v4 = vld [vmem:[%s3834_s1] sm:$0xff]  ;;  %s2756_s24 = sshll.u32 %s3609_s19, 7  ;;  %s450_s22 = scalar_lea.vmem [#allocation14], %s2623_s18 }
  0xc4   : > { %2794 = vmatpush3.bf16.msra.mxu0 %v2967_v0  ;;  %v453_v5 = vld [vmem:[%s3834_s1 + $0x8] sm:$0xff]  ;;  %v2971_v7 = vld [vmem:[#allocation6 + $0x20] sm:$0xff]   ;;  %v2977_v10 = vld [vmem:[#allocation8 + $0x10] sm:$0xff]   ;;  %s4540_s25 = sld [smem:[#allocation45_spill]]  ;;  %s2467_s27 = scalar_lea.sflag [#allocation5], %s3830_s10 }
  0xc5   : > { %2795 = vmatprep.subr.bf16.mxu0 %v2968_v1  ;;  %v460_v6 = vpack.c.bf16 %v453_v5, %v452_v4  ;;  %v2975_v8 = vld [vmem:[#allocation8] sm:$0xff]   ;;  %v2976_v9 = vld [vmem:[#allocation8 + $0x8] sm:$0xff]   ;;  %v2978_v12 = vld [vmem:[#allocation8 + $0x18] sm:$0xff]   ;;  %p4541_p7 = scmp.ne.s32.totalorder %s4482_s26, 0  ;;  %s3532_s19 = smov [#allocation14]  }
  0xc6   : > { %2817 = vmatprep.subr.bf16.mxu1 %v2975_v8  ;;  %v2972_v11 = vld [vmem:[#allocation6 + $0x28] sm:$0xff]   ;;  %v2973_v13 = vld [vmem:[#allocation6 + $0x30] sm:$0xff]   ;;  %v2979_v14 = vld [vmem:[#allocation8 + $0x20] sm:$0xff]   ;;  %s3441_s28 = sshll.u32 %s3532_s19, 4  ;;  %s3442_s28 = int_to_ptr.vmem [resolvable:$false] %s3441_s28 }
  0xc7   : > { %2809 = vmatprep.mubr.bf16.mxu0 %v460_v6  ;;  %2818 = vmatpush3.bf16.msra.mxu1 %v2975_v8  ;;  %v2974_v15 = vld [vmem:[#allocation6 + $0x38] sm:$0xff]   ;;  %v454_v16 = vld [vmem:[%s3834_s1 + $0x10] sm:$0xff]  ;;  %v2980_v18 = vld [vmem:[#allocation8 + $0x28] sm:$0xff]   ;;  %s3443_s21 = scalar_lea.vmem %s3442_s28, 256 }
  0xc8   : > { %2796 = vmatpush3.bf16.msra.mxu0 %v2968_v1  ;;  %2819 = vmatprep.subr.bf16.mxu1 %v2976_v9  ;;  %v455_v17 = vld [vmem:[%s3834_s1 + $0x18] sm:$0xff]  ;;  %v456_v19 = vld [vmem:[%s3834_s1 + $0x20] sm:$0xff]  ;;  %v457_v20 = vld [vmem:[%s3834_s1 + $0x28] sm:$0xff] }
  0xc9   : > { %2797 = vmatprep.subr.bf16.mxu0 %v2969_v2  ;;  %v461_v21 = vpack.c.bf16 %v455_v17, %v454_v16  ;;  %v462_v22 = vpack.c.bf16 %v457_v20, %v456_v19  ;;  %v458_v23 = vld [vmem:[%s3834_s1 + $0x30] sm:$0xff]  ;;  %v459_v24 = vld [vmem:[%s3834_s1 + $0x38] sm:$0xff]  ;;  %v2624_v41 = vld [vmem:[%s4451_s2] ss:$0 sm:$0xff]  ;;  %s2480_s1 = sshll.u32 %s450_s22, 4  ;;  %s4407_s1 = int_to_ptr.vmem [resolvable:$true] %s2480_s1 }
  0xca   : > { %v463_v25 = vpack.c.bf16 %v459_v24, %v458_v23  ;;  %v2981_v26 = vld [vmem:[#allocation8 + $0x30] sm:$0xff]   ;;  %v2982_v27 = vld [vmem:[#allocation8 + $0x38] sm:$0xff]   ;;  %s4405_s30 = scalar_lea.hbm %s4540_s25, %s2756_s24  ;;  %s3437_s23 = scalar_lea.vmem %s4407_s1, 128 }
  0xcb   : > { %2820 = vmatpush3.bf16.msra.mxu1 %v2976_v9  ;;  %v2985_v28 = vld [vmem:[#allocation9 + $0xc] ss:$16 sps:$4 sm:$0xff]   ;;  %v2986_v29 = vld [vmem:[#allocation9] ss:$16 sps:$4 sm:$0xff]   ;;  %v2988_v30 = vld [vmem:[#allocation9 + $0x4] ss:$16 sps:$4 sm:$0xff]   ;;  %p3438_p2 = scmp.ne.s32.totalorder %s4407_s1, %s3437_s23  ;;  %p3444_p11 = scmp.lt.s32.totalorder %s4407_s1, %s3442_s28 }
  0xcc   : > { %2798 = vmatpush3.bf16.msra.mxu0 %v2969_v2  ;;  %2821 = vmatprep.subr.bf16.mxu1 %v2977_v10  ;;  %v2994_v31 = vld [vmem:[#allocation9 + $0x24] ss:$16 sps:$4 sm:$0xff]   ;;  %v2992_v32 = vld [vmem:[#allocation9 + $0x20] ss:$16 sps:$4 sm:$0xff]   ;;  %v2983_v57 = vld [vmem:[#allocation9 + $0x8] ss:$16 sps:$4 sm:$0xff]   ;;  %p3445_p12 = scmp.lt.s32.totalorder %s3443_s21, %s3437_s23 }
  0xcd   : > { %2799 = vmatprep.subr.bf16.mxu0 %v2970_v3  ;;  %v3000_v33 = vld [vmem:[#allocation9 + $0x44] ss:$16 sps:$4 sm:$0xff]   ;;  %v2998_v34 = vld [vmem:[#allocation9 + $0x40] ss:$16 sps:$4 sm:$0xff]   ;;  %v2991_v60 = vld [vmem:[#allocation9 + $0x2c] ss:$16 sps:$4 sm:$0xff]   ;;  %p3439_p10 = pnand %p3438_p2, %p4541_p7 }
  0xce   : > { %v3006_v35 = vld [vmem:[#allocation9 + $0x64] ss:$16 sps:$4 sm:$0xff]   ;;  %v3004_v36 = vld [vmem:[#allocation9 + $0x60] ss:$16 sps:$4 sm:$0xff]   ;;  %v2989_v4 = vld [vmem:[#allocation9 + $0x28] ss:$16 sps:$4 sm:$0xff]   ;;  %p3446_p13 = por %p3445_p12, %p3444_p11 }
  0xcf   : > { %2822 = vmatpush3.bf16.msra.mxu1 %v2977_v10  ;;  %v3012_v37 = vld [vmem:[#allocation9 + $0x84] ss:$16 sps:$4 sm:$0xff]   ;;  %v3010_v38 = vld [vmem:[#allocation9 + $0x80] ss:$16 sps:$4 sm:$0xff]   ;;  %v2997_v6 = vld [vmem:[#allocation9 + $0x4c] ss:$16 sps:$4 sm:$0xff]   ;;  %p3440_p1 = pneg %p3439_p10 }
  0xd0   : > { %2800 = vmatpush3.bf16.msra.mxu0 %v2970_v3  ;;  %2823 = vmatprep.subr.bf16.mxu1 %v2978_v12  ;;  %v3018_v39 = vld [vmem:[#allocation9 + $0xa4] ss:$16 sps:$4 sm:$0xff]   ;;  %v3016_v40 = vld [vmem:[#allocation9 + $0xa0] ss:$16 sps:$4 sm:$0xff]   ;;  %v2995_v10 = vld [vmem:[#allocation9 + $0x48] ss:$16 sps:$4 sm:$0xff]  }
  0xd1   : > { %2801 = vmatprep.subr.bf16.mxu0 %v2971_v7  ;;  %v3013_v16 = vld [vmem:[#allocation9 + $0xa8] ss:$16 sps:$4 sm:$0xff]   ;;  %v3021_v17 = vld [vmem:[#allocation9 + $0xcc] ss:$16 sps:$4 sm:$0xff]   ;;  %v3022_v20 = vld [vmem:[#allocation9 + $0xc0] ss:$16 sps:$4 sm:$0xff]   ;;  %p3447_p8 = pnand %p3446_p13, %p3440_p1 }
  0xd2   : > { %v3019_v19 = vld [vmem:[#allocation9 + $0xc8] ss:$16 sps:$4 sm:$0xff]   ;;  %v3028_v24 = vld [vmem:[#allocation9 + $0xe0] ss:$16 sps:$4 sm:$0xff]  }
  0xd3   : > { %2824 = vmatpush3.bf16.msra.mxu1 %v2978_v12  ;;  %v3001_v12 = vld [vmem:[#allocation9 + $0x68] ss:$16 sps:$4 sm:$0xff]  }
  0xd4   : > { %2802 = vmatpush3.bf16.msra.mxu0 %v2971_v7  ;;  %2825 = vmatprep.subr.bf16.mxu1 %v2979_v14  ;;  %v3025_v23 = vld [vmem:[#allocation9 + $0xe8] ss:$16 sps:$4 sm:$0xff]  }
  0xd5   : > { %2803 = vmatprep.subr.bf16.mxu0 %v2972_v11 }
  0xd7   : > { %2826 = vmatpush3.bf16.msra.mxu1 %v2979_v14  ;;  %v3007_v14 = vld [vmem:[#allocation9 + $0x88] ss:$16 sps:$4 sm:$0xff]  }
  0xd8   : > { %2804 = vmatpush3.bf16.msra.mxu0 %v2972_v11  ;;  %2827 = vmatprep.subr.bf16.mxu1 %v2980_v18  ;;  %v3003_v11 = vld [vmem:[#allocation9 + $0x6c] ss:$16 sps:$4 sm:$0xff]  }
  0xd9   : > { %2805 = vmatprep.subr.bf16.mxu0 %v2973_v13 }
  0xdb   : > { %2828 = vmatpush3.bf16.msra.mxu1 %v2980_v18  ;;  %v3024_v18 = vld [vmem:[#allocation9 + $0xc4] ss:$16 sps:$4 sm:$0xff]  }
  0xdc   : > { %2806 = vmatpush3.bf16.msra.mxu0 %v2973_v13  ;;  %2829 = vmatprep.subr.bf16.mxu1 %v2981_v26  ;;  %v3009_v13 = vld [vmem:[#allocation9 + $0x8c] ss:$16 sps:$4 sm:$0xff]  }
  0xdd   : > { %2807 = vmatprep.subr.bf16.mxu0 %v2974_v15 }
  0xdf   : > { %2830 = vmatpush3.bf16.msra.mxu1 %v2981_v26  ;;  %v3865_v26 = vld [vmem:[#allocation11 + $0x4] ss:$16 sps:$4 sm:$0xff]  }
  0xe0   : > { %2808 = vmatpush3.bf16.msra.mxu0 %v2974_v15  ;;  %2831 = vmatprep.subr.bf16.mxu1 %v2982_v27  ;;  %v3015_v15 = vld [vmem:[#allocation9 + $0xac] ss:$16 sps:$4 sm:$0xff]  }
  0xe1   : > { %974 = vmatprep.subr.bf16.mxu0 %v2988_v30 }
  0xe3   : > { %2810 = vmatmul.mubr.bf16.vlgmr.msra.gmra.mrb[0].mxu0 %v461_v21  ;;  %2832 = vmatpush3.bf16.msra.mxu1 %v2982_v27  ;;  %v3027_v21 = vld [vmem:[#allocation9 + $0xec] ss:$16 sps:$4 sm:$0xff]   ;;  %v4468_v27 = vmov 0  }
  0xe4   : > { %2813 = vmatprep.mubr.bf16.mxu0 %v462_v22  ;;  %1047 = vmatprep.subr.bf16.mxu1 %v2985_v28  ;;  %v3030_v22 = vld [vmem:[#allocation9 + $0xe4] ss:$16 sps:$4 sm:$0xff]   ;;  %v2633_v28 = vld [vmem:[%s4453_s4] ss:$0 sm:$0xff] }
  0xe5   : > { %975 = vmatpush1.bf16.msra.mxu0 %v2986_v29 }
  0xe6   : > { %976 = vmatprep.subr.bf16.mxu0 %v2994_v31 }
  0xe9   : > { %977 = vmatpush1.bf16.msra.mxu0 %v2992_v32 }
  0xea   : > { %978 = vmatprep.subr.bf16.mxu0 %v3000_v33 }
  0xeb   : > { %2814 = vmatmul.mubr.bf16.gmra.mrb[4].mxu0 %v463_v25  ;;  %v3863_v25 = vld [vmem:[#allocation11 + $0xc] ss:$16 sps:$4 sm:$0xff]  }
  0xec   : > { %1006 = vmatprep.mubr.bf16.mxu0 %v4468_v27 }
  0xed   : > { %979 = vmatpush1.bf16.msra.mxu0 %v2998_v34 }
  0xee   : > { %980 = vmatprep.subr.bf16.mxu0 %v3006_v35 }
  0xf1   : > { %981 = vmatpush1.bf16.msra.mxu0 %v3004_v36 }
  0xf2   : > { %982 = vmatprep.subr.bf16.mxu0 %v3012_v37 }
  0xf5   : > { %983 = vmatpush1.bf16.msra.mxu0 %v3010_v38 }
  0xf6   : > { %984 = vmatprep.subr.bf16.mxu0 %v3018_v39 }
  0xf9   : > { %985 = vmatpush1.bf16.msra.mxu0 %v3016_v40 }
  0xfa   : > { %986 = vmatprep.subr.bf16.mxu0 %v3024_v18  ;;  %v3952_v18 = vld [vmem:[#allocation11 + $0xc0] ss:$16 sps:$4 sm:$0xff]  }
  0xfd   : > { %987 = vmatpush1.bf16.msra.mxu0 %v3022_v20  ;;  %v3958_v20 = vld [vmem:[#allocation11 + $0xe4] ss:$16 sps:$4 sm:$0xff]  }
  0xfe   : > { %988 = vmatprep.subr.bf16.mxu0 %v3030_v22  ;;  %v3964_v22 = vld [vmem:[#allocation11 + $0xe0] ss:$16 sps:$4 sm:$0xff]  }
 0x101   : > { %989 = vmatpush1.bf16.msra.mxu0 %v3028_v24 }
 0x102   : > { %1351 = vmatprep.subr.bf16.mxu0 %v3865_v26 }
 0x1b6   : > { %v2811_v42 = vpop.f32.mrb[0].mxu0 }
 0x1b7   : > { %v578_v43 = vadd.f32 %v2811_v42, %v2624_v41  ;;  %v569_v44 = vpop.f32.mrb[1].mxu0  ;;  %v3874_v42 = vld [vmem:[#allocation11 + $0x8] ss:$16 sps:$4 sm:$0xff]  }
 0x1b8   : > { %v570_v45 = vadd.f32 %v2624_v41, %v569_v44  ;;  %v2812_v46 = vpop.f32.mrb[2].mxu0 }
 0x1b9   : > { %v581_v47 = vadd.f32 %v2812_v46, %v2624_v41  ;;  %v572_v48 = vpop.f32.mrb[3].mxu0  ;;  %v602_v50 = vmax.f32 %v578_v43, 0.0  ;;  %v3876_v43 = vld [vmem:[#allocation11] ss:$16 sps:$4 sm:$0xff]   ;;  %v3878_v46 = vld [vmem:[#allocation11 + $0x2c] ss:$16 sps:$4 sm:$0xff]  }
 0x1ba   : > { %v573_v49 = vadd.f32 %v2624_v41, %v572_v48  ;;  %v600_v52 = vmax.f32 %v570_v45, 0.0 }
 0x1bb   : > { %v603_v51 = vmax.f32 %v581_v47, 0.0  ;;  %v3880_v47 = vld [vmem:[#allocation11 + $0x24] ss:$16 sps:$4 sm:$0xff]  }
 0x1bc   : > { %v601_v53 = vmax.f32 %v573_v49, 0.0 }
 0x1bd   : > { %v609_v54 = vpack.c.bf16 %v603_v51, %v602_v50 }
 0x1be   : > { %v2815_v55 = vpop.f32.mrb[4].mxu0  ;;  %v608_v56 = vpack.c.bf16 %v601_v53, %v600_v52 }
 0x1bf   : > { %v594_v58 = vadd.f32 %v2815_v55, %v2624_v41  ;;  %v585_v59 = vpop.f32.mrb[5].mxu0  ;;  %v3884_v55 = vld [vmem:[#allocation11 + $0x28] ss:$16 sps:$4 sm:$0xff]  }
 0x1c0   : > { %v586_v61 = vadd.f32 %v2624_v41, %v585_v59  ;;  %2833 = vmatprep.mubr.bf16.mxu1 %v608_v56  ;;  %v2816_v62 = vpop.f32.mrb[6].mxu0  ;;  %v3886_v56 = vld [vmem:[#allocation11 + $0x20] ss:$16 sps:$4 sm:$0xff]   ;;  %v3890_v59 = vld [vmem:[#allocation11 + $0x4c] ss:$16 sps:$4 sm:$0xff]  }
 0x1c1   : > { %v606_v63 = vmax.f32 %v594_v58, 0.0  ;;  %v597_v0 = vadd.f32 %v2816_v62, %v2624_v41  ;;  %2834 = vmatmul.mubr.bf16.vlgmr.msra.gmra.mrb[0].mxu1 %v609_v54  ;;  %v588_v1 = vpop.f32.mrb[7].mxu0 }
 0x1c2   : > { %v604_v2 = vmax.f32 %v586_v61, 0.0  ;;  %v589_v3 = vadd.f32 %v2624_v41, %v588_v1  ;;  %1048 = vmatpush1.bf16.msra.mxu1 %v2983_v57  ;;  %v3900_v1 = vld [vmem:[#allocation11 + $0x40] ss:$16 sps:$4 sm:$0xff]  }
 0x1c3   : > { %v607_v5 = vmax.f32 %v597_v0, 0.0  ;;  %1049 = vmatprep.subr.bf16.mxu1 %v2991_v60  ;;  %v3892_v60 = vld [vmem:[#allocation11 + $0x44] ss:$16 sps:$4 sm:$0xff]   ;;  %v3898_v0 = vld [vmem:[#allocation11 + $0x48] ss:$16 sps:$4 sm:$0xff]  }
 0x1c4   : > { %v605_v7 = vmax.f32 %v589_v3, 0.0  ;;  %v3904_v3 = vld [vmem:[#allocation11 + $0x6c] ss:$16 sps:$4 sm:$0xff]  }
 0x1c5   : > { %v611_v8 = vpack.c.bf16 %v607_v5, %v606_v63  ;;  %v3910_v5 = vld [vmem:[#allocation11 + $0x68] ss:$16 sps:$4 sm:$0xff]  }
 0x1c6   : > { %v610_v9 = vpack.c.bf16 %v605_v7, %v604_v2  ;;  %1050 = vmatpush1.bf16.msra.mxu1 %v2989_v4  ;;  %v3906_v4 = vld [vmem:[#allocation11 + $0x64] ss:$16 sps:$4 sm:$0xff]   ;;  %v3916_v7 = vld [vmem:[#allocation11 + $0x8c] ss:$16 sps:$4 sm:$0xff]  }
 0x1c7   : > { %1051 = vmatprep.subr.bf16.mxu1 %v2997_v6  ;;  %v3912_v6 = vld [vmem:[#allocation11 + $0x60] ss:$16 sps:$4 sm:$0xff]  }
 0x1c8   : > { %2837 = vmatprep.mubr.bf16.mxu1 %v610_v9  ;;  %v3924_v9 = vld [vmem:[#allocation11 + $0x88] ss:$16 sps:$4 sm:$0xff]  }
 0x1c9   : > { %2838 = vmatmul.mubr.bf16.gmra.mrb[4].mxu1 %v611_v8  ;;  %v3918_v8 = vld [vmem:[#allocation11 + $0x84] ss:$16 sps:$4 sm:$0xff]  }
 0x1ca   : > { %1052 = vmatpush1.bf16.msra.mxu1 %v2995_v10  ;;  %1079 = vmatprep.mubr.bf16.mxu1 %v4468_v27  ;;  %v3926_v10 = vld [vmem:[#allocation11 + $0x80] ss:$16 sps:$4 sm:$0xff]  }
 0x1cb   : > { %1053 = vmatprep.subr.bf16.mxu1 %v3003_v11  ;;  %v3930_v11 = vld [vmem:[#allocation11 + $0xac] ss:$16 sps:$4 sm:$0xff]  }
 0x1ce   : > { %1054 = vmatpush1.bf16.msra.mxu1 %v3001_v12  ;;  %v3932_v12 = vld [vmem:[#allocation11 + $0xa4] ss:$16 sps:$4 sm:$0xff]  }
 0x1cf   : > { %1055 = vmatprep.subr.bf16.mxu1 %v3009_v13  ;;  %v3936_v13 = vld [vmem:[#allocation11 + $0xa8] ss:$16 sps:$4 sm:$0xff]  }
 0x1d2   : > { %1056 = vmatpush1.bf16.msra.mxu1 %v3007_v14  ;;  %v3938_v14 = vld [vmem:[#allocation11 + $0xa0] ss:$16 sps:$4 sm:$0xff]  }
 0x1d3   : > { %1057 = vmatprep.subr.bf16.mxu1 %v3015_v15  ;;  %v3942_v15 = vld [vmem:[#allocation11 + $0xcc] ss:$16 sps:$4 sm:$0xff]  }
 0x1d6   : > { %1058 = vmatpush1.bf16.msra.mxu1 %v3013_v16  ;;  %v3944_v16 = vld [vmem:[#allocation11 + $0xc4] ss:$16 sps:$4 sm:$0xff]  }
 0x1d7   : > { %1059 = vmatprep.subr.bf16.mxu1 %v3021_v17  ;;  %v3950_v17 = vld [vmem:[#allocation11 + $0xc8] ss:$16 sps:$4 sm:$0xff]  }
 0x1da   : > { %1060 = vmatpush1.bf16.msra.mxu1 %v3019_v19  ;;  %v3956_v19 = vld [vmem:[#allocation11 + $0xec] ss:$16 sps:$4 sm:$0xff]  }
 0x1db   : > { %1061 = vmatprep.subr.bf16.mxu1 %v3027_v21  ;;  %v3962_v21 = vld [vmem:[#allocation11 + $0xe8] ss:$16 sps:$4 sm:$0xff]  }
 0x1de   : > { %1062 = vmatpush1.bf16.msra.mxu1 %v3025_v23  ;;  %v794_v23 = vlaneseq }
 0x1df   : > { %1392 = vmatprep.subr.bf16.mxu1 %v3863_v25 }
 0x1e0   : > { %v795_v24 = vshrl.u32 %v794_v23, 7 }
 0x294   : > { %v2835_v29 = vpop.f32.mrb[0].mxu1 }
 0x295   : > { %v726_v30 = vadd.f32 %v2835_v29, %v2633_v28  ;;  %v717_v31 = vpop.f32.mrb[1].mxu1  ;;  %v804_v29 = vsub.s32 2, %v795_v24 }
 0x296   : > { %v718_v32 = vadd.f32 %v2633_v28, %v717_v31  ;;  %v2836_v33 = vpop.f32.mrb[2].mxu1  ;;  %v800_v31 = vsub.s32 1, %v795_v24 }
 0x297   : > { %v729_v34 = vadd.f32 %v2836_v33, %v2633_v28  ;;  %v720_v35 = vpop.f32.mrb[3].mxu1  ;;  %v750_v37 = vmax.f32 %v726_v30, 0.0  ;;  %v792_v30 = vld [vmem:[%s4456_s7] sm:$0xf] }
 0x298   : > { %v721_v36 = vadd.f32 %v2633_v28, %v720_v35  ;;  %v748_v39 = vmax.f32 %v718_v32, 0.0  ;;  %v808_v32 = vsub.s32 3, %v795_v24 }
 0x299   : > { %v751_v38 = vmax.f32 %v729_v34, 0.0 }
 0x29a   : > { %v749_v40 = vmax.f32 %v721_v36, 0.0  ;;  %v805_v36 = vrot.slane %v792_v30, %v804_v29 }
 0x29b   : > { %v757_v41 = vpack.c.bf16 %v751_v38, %v750_v37 }
 0x29c   : > { %v756_v44 = vpack.c.bf16 %v749_v40, %v748_v39  ;;  %v2839_v45 = vpop.f32.mrb[4].mxu1  ;;  %v801_v39 = vrot.slane %v792_v30, %v800_v31  ;;  %v809_v40 = vrot.slane %v792_v30, %v808_v32 }
 0x29d   : > { %v742_v48 = vadd.f32 %v2839_v45, %v2633_v28  ;;  %v733_v49 = vpop.f32.mrb[5].mxu1 }
 0x29e   : > { %v734_v50 = vadd.f32 %v2633_v28, %v733_v49  ;;  %1007 = vmatmul.mubr.bf16.vlgmr.msra.gmra.mrb[8].mxu0 %v756_v44  ;;  %1080 = vmatmul.mubr.bf16.vlgmr.msra.gmra.mrb[8].mxu1 %v756_v44  ;;  %v2840_v51 = vpop.f32.mrb[6].mxu1 }
 0x29f   : > { %v754_v52 = vmax.f32 %v742_v48, 0.0  ;;  %1393 = vmatpush1.bf16.msra.mxu1 %v3874_v42  ;;  %v745_v53 = vadd.f32 %v2840_v51, %v2633_v28  ;;  %1352 = vmatpush1.bf16.msra.mxu0 %v3876_v43  ;;  %v736_v54 = vpop.f32.mrb[7].mxu1 }
 0x2a0   : > { %v752_v57 = vmax.f32 %v734_v50, 0.0  ;;  %v737_v58 = vadd.f32 %v2633_v28, %v736_v54  ;;  %1394 = vmatprep.subr.bf16.mxu1 %v3878_v46  ;;  %1353 = vmatprep.subr.bf16.mxu0 %v3880_v47  ;;  %v796_v28 = vsub.s32 0, %v795_v24 }
 0x2a1   : > { %v755_v61 = vmax.f32 %v745_v53, 0.0  ;;  %1016 = vmatprep.mubr.bf16.mxu0 %v4468_v27  ;;  %1089 = vmatprep.mubr.bf16.mxu1 %v4468_v27 }
 0x2a2   : > { %v753_v62 = vmax.f32 %v737_v58, 0.0  ;;  %v797_v35 = vrot.slane %v792_v30, %v796_v28 }
 0x2a3   : > { %v759_v63 = vpack.c.bf16 %v755_v61, %v754_v52  ;;  %1395 = vmatpush1.bf16.msra.mxu1 %v3884_v55  ;;  %1354 = vmatpush1.bf16.msra.mxu0 %v3886_v56 }
 0x2a4   : > { %v758_v2 = vpack.c.bf16 %v753_v62, %v752_v57  ;;  %1396 = vmatprep.subr.bf16.mxu1 %v3890_v59  ;;  %1355 = vmatprep.subr.bf16.mxu0 %v3892_v60 }
 0x2a6   : > { %1017 = vmatmul.mubr.bf16.gmra.mrb[12].mxu0 %v757_v41  ;;  %1090 = vmatmul.mubr.bf16.gmra.mrb[12].mxu1 %v757_v41 }
 0x2a7   : > { %1397 = vmatpush1.bf16.msra.mxu1 %v3898_v0  ;;  %1356 = vmatpush1.bf16.msra.mxu0 %v3900_v1 }
 0x2a8   : > { %1398 = vmatprep.subr.bf16.mxu1 %v3904_v3  ;;  %1357 = vmatprep.subr.bf16.mxu0 %v3906_v4 }
 0x2a9   : > { %1026 = vmatprep.mubr.bf16.mxu0 %v4468_v27  ;;  %1099 = vmatprep.mubr.bf16.mxu1 %v4468_v27 }
 0x2ab   : > { %1399 = vmatpush1.bf16.msra.mxu1 %v3910_v5  ;;  %1358 = vmatpush1.bf16.msra.mxu0 %v3912_v6 }
 0x2ac   : > { %1400 = vmatprep.subr.bf16.mxu1 %v3916_v7  ;;  %1359 = vmatprep.subr.bf16.mxu0 %v3918_v8 }
 0x2ae   : > { %1027 = vmatmul.mubr.bf16.gmra.mrb[16].mxu0 %v758_v2  ;;  %1100 = vmatmul.mubr.bf16.gmra.mrb[16].mxu1 %v758_v2 }
 0x2af   : > { %1401 = vmatpush1.bf16.msra.mxu1 %v3924_v9  ;;  %1360 = vmatpush1.bf16.msra.mxu0 %v3926_v10 }
 0x2b0   : > { %1402 = vmatprep.subr.bf16.mxu1 %v3930_v11  ;;  %1361 = vmatprep.subr.bf16.mxu0 %v3932_v12 }
 0x2b1   : > { %1036 = vmatprep.mubr.bf16.mxu0 %v4468_v27  ;;  %1109 = vmatprep.mubr.bf16.mxu1 %v4468_v27 }
 0x2b3   : > { %1403 = vmatpush1.bf16.msra.mxu1 %v3936_v13  ;;  %1362 = vmatpush1.bf16.msra.mxu0 %v3938_v14 }
 0x2b4   : > { %1404 = vmatprep.subr.bf16.mxu1 %v3942_v15  ;;  %1363 = vmatprep.subr.bf16.mxu0 %v3944_v16 }
 0x2b6   : > { %1037 = vmatmul.mubr.bf16.gmra.mrb[20].mxu0 %v759_v63  ;;  %1110 = vmatmul.mubr.bf16.gmra.mrb[20].mxu1 %v759_v63 }
 0x2b7   : > { %1405 = vmatpush1.bf16.msra.mxu1 %v3950_v17  ;;  %1364 = vmatpush1.bf16.msra.mxu0 %v3952_v18 }
 0x2b8   : > { %1406 = vmatprep.subr.bf16.mxu1 %v3956_v19  ;;  %1365 = vmatprep.subr.bf16.mxu0 %v3958_v20 }
 0x2b9   : > { %1383 = vmatprep.mubr.bf16.mxu0 %v4468_v27  ;;  %1424 = vmatprep.mubr.bf16.mxu1 %v4468_v27 }
 0x2bb   : > { %1407 = vmatpush1.bf16.msra.mxu1 %v3962_v21  ;;  %1366 = vmatpush1.bf16.msra.mxu0 %v3964_v22 }
 0x2bc   : > { %1476 = vmatprep.subr.bf16.mxu0 %v3865_v26  ;;  %1517 = vmatprep.subr.bf16.mxu1 %v3863_v25 }
 0x2be   : > { %1384 = vmatmul.mubr.bf16.vlgmr.msra.gmra.mrb[24].mxu0 %v4468_v27  ;;  %1425 = vmatmul.mubr.bf16.vlgmr.msra.gmra.mrb[24].mxu1 %v4468_v27 }
 0x2bf   : > { %1477 = vmatpush1.bf16.msra.mxu0 %v3876_v43  ;;  %1518 = vmatpush1.bf16.msra.mxu1 %v3874_v42 }
 0x2c0   : > { %1478 = vmatprep.subr.bf16.mxu0 %v3880_v47  ;;  %1519 = vmatprep.subr.bf16.mxu1 %v3878_v46 }
 0x2c1   : > { %1508 = vmatprep.mubr.bf16.mxu0 %v4468_v27  ;;  %1549 = vmatprep.mubr.bf16.mxu1 %v4468_v27 }
 0x2c3   : > { %1479 = vmatpush1.bf16.msra.mxu0 %v3886_v56  ;;  %1520 = vmatpush1.bf16.msra.mxu1 %v3884_v55 }
 0x2c4   : > { %1480 = vmatprep.subr.bf16.mxu0 %v3892_v60  ;;  %1521 = vmatprep.subr.bf16.mxu1 %v3890_v59 }
 0x2c7   : > { %1481 = vmatpush1.bf16.msra.mxu0 %v3900_v1  ;;  %1522 = vmatpush1.bf16.msra.mxu1 %v3898_v0 }
 0x2c8   : > { %1482 = vmatprep.subr.bf16.mxu0 %v3906_v4  ;;  %1523 = vmatprep.subr.bf16.mxu1 %v3904_v3 }
 0x2cb   : > { %1483 = vmatpush1.bf16.msra.mxu0 %v3912_v6  ;;  %1524 = vmatpush1.bf16.msra.mxu1 %v3910_v5 }
 0x2cc   : > { %1484 = vmatprep.subr.bf16.mxu0 %v3918_v8  ;;  %1525 = vmatprep.subr.bf16.mxu1 %v3916_v7 }
 0x2cf   : > { %1485 = vmatpush1.bf16.msra.mxu0 %v3926_v10  ;;  %1526 = vmatpush1.bf16.msra.mxu1 %v3924_v9 }
 0x2d0   : > { %1486 = vmatprep.subr.bf16.mxu0 %v3932_v12  ;;  %1527 = vmatprep.subr.bf16.mxu1 %v3930_v11 }
 0x2d3   : > { %1487 = vmatpush1.bf16.msra.mxu0 %v3938_v14  ;;  %1528 = vmatpush1.bf16.msra.mxu1 %v3936_v13 }
 0x2d4   : > { %1488 = vmatprep.subr.bf16.mxu0 %v3944_v16  ;;  %1529 = vmatprep.subr.bf16.mxu1 %v3942_v15 }
 0x2d7   : > { %1489 = vmatpush1.bf16.msra.mxu0 %v3952_v18  ;;  %1530 = vmatpush1.bf16.msra.mxu1 %v3950_v17 }
 0x2d8   : > { %1490 = vmatprep.subr.bf16.mxu0 %v3958_v20  ;;  %1531 = vmatprep.subr.bf16.mxu1 %v3956_v19 }
 0x2db   : > { %1491 = vmatpush1.bf16.msra.mxu0 %v3964_v22  ;;  %1532 = vmatpush1.bf16.msra.mxu1 %v3962_v21 }
 0x2dc   : > { %1601 = vmatprep.subr.bf16.mxu0 %v3865_v26  ;;  %1642 = vmatprep.subr.bf16.mxu1 %v3863_v25 }
 0x371   : > { %v4013_v33 = vpop.f32.mrb[8].mxu0  ;;  %v4015_v34 = vpop.f32.mrb[8].mxu1 }
 0x372   : > { %v1010_v37 = vpop.f32.mrb[9].mxu0  ;;  %v1083_v38 = vpop.f32.mrb[9].mxu1 }
 0x373   : > { %v1012_v41 = vpop.f32.mrb[10].mxu0  ;;  %v1085_v44 = vpop.f32.mrb[10].mxu1 }
 0x374   : > { %v4017_v45 = vadd.f32 %v1012_v41, %v797_v35  ;;  %v4019_v48 = vadd.f32 %v1085_v44, %v805_v36  ;;  %v1014_v49 = vpop.f32.mrb[11].mxu0  ;;  %v1087_v50 = vpop.f32.mrb[11].mxu1 }
 0x375   : > { %v4021_v51 = vadd.f32 %v1014_v49, %v801_v39  ;;  %v4023_v52 = vadd.f32 %v1087_v50, %v809_v40 }
 0x379   : > { %v1018_v53 = vpop.f32.mrb[12].mxu0  ;;  %v1091_v54 = vpop.f32.mrb[12].mxu1 }
 0x37a   : > { %v4025_v57 = vadd.f32 %v1018_v53, %v797_v35  ;;  %v4027_v58 = vadd.f32 %v1091_v54, %v805_v36  ;;  %v1020_v61 = vpop.f32.mrb[13].mxu0  ;;  %v1093_v62 = vpop.f32.mrb[13].mxu1 }
 0x37b   : > { %v4029_v63 = vadd.f32 %v1020_v61, %v801_v39  ;;  %v4031_v2 = vadd.f32 %v1093_v62, %v809_v40  ;;  %v1022_v23 = vpop.f32.mrb[14].mxu0  ;;  %v1095_v24 = vpop.f32.mrb[14].mxu1 }
 0x37c   : > { %4492 = vst [vmem:[#allocation20_spill] sm:$0xff] %v4027_v58  ;;  %v4033_v28 = vadd.f32 %v1022_v23, %v797_v35  ;;  %v4035_v29 = vadd.f32 %v1095_v24, %v805_v36  ;;  %v1024_v30 = vpop.f32.mrb[15].mxu0  ;;  %v1097_v31 = vpop.f32.mrb[15].mxu1 }
 0x37d   : > { %4493 = vst [vmem:[#allocation21_spill] sm:$0xff] %v4029_v63  ;;  %4494 = vst [vmem:[#allocation22_spill] sm:$0xff] %v4031_v2  ;;  %v4037_v32 = vadd.f32 %v1024_v30, %v801_v39  ;;  %v4039_v41 = vadd.f32 %v1097_v31, %v809_v40 }
 0x37e   : > { %4495 = vst [vmem:[#allocation23_spill] sm:$0xff] %v4033_v28  ;;  %4496 = vst [vmem:[#allocation24_spill] sm:$0xff] %v4035_v29 }
 0x37f   : > { %4497 = vst [vmem:[#allocation25_spill] sm:$0xff] %v4037_v32  ;;  %4498 = vst [vmem:[#allocation26_spill] sm:$0xff] %v4039_v41 }
 0x381   : > { %v1028_v44 = vpop.f32.mrb[16].mxu0  ;;  %v1101_v49 = vpop.f32.mrb[16].mxu1 }
 0x382   : > { %v4041_v50 = vadd.f32 %v1028_v44, %v797_v35  ;;  %v4043_v53 = vadd.f32 %v1101_v49, %v805_v36  ;;  %v1030_v54 = vpop.f32.mrb[17].mxu0  ;;  %v1103_v61 = vpop.f32.mrb[17].mxu1 }
 0x383   : > { %v4045_v62 = vadd.f32 %v1030_v54, %v801_v39  ;;  %v4047_v23 = vadd.f32 %v1103_v61, %v809_v40  ;;  %v1032_v24 = vpop.f32.mrb[18].mxu0  ;;  %v1105_v27 = vpop.f32.mrb[18].mxu1 }
 0x384   : > { %4499 = vst [vmem:[#allocation27_spill] sm:$0xff] %v4041_v50  ;;  %4500 = vst [vmem:[#allocation28_spill] sm:$0xff] %v4043_v53  ;;  %v4049_v29 = vadd.f32 %v1032_v24, %v797_v35  ;;  %v4051_v30 = vadd.f32 %v1105_v27, %v805_v36  ;;  %v1034_v31 = vpop.f32.mrb[19].mxu0  ;;  %v1107_v41 = vpop.f32.mrb[19].mxu1 }
 0x385   : > { %4501 = vst [vmem:[#allocation29_spill] sm:$0xff] %v4045_v62  ;;  %4502 = vst [vmem:[#allocation30_spill] sm:$0xff] %v4047_v23  ;;  %v4053_v32 = vadd.f32 %v1034_v31, %v801_v39  ;;  %v4055_v44 = vadd.f32 %v1107_v41, %v809_v40 }
 0x386   : > { %4503 = vst [vmem:[#allocation31_spill] sm:$0xff] %v4049_v29  ;;  %4504 = vst [vmem:[#allocation32_spill] sm:$0xff] %v4051_v30 }
 0x387   : > { %4505 = vst [vmem:[#allocation33_spill] sm:$0xff] %v4053_v32  ;;  %4506 = vst [vmem:[#allocation34_spill] sm:$0xff] %v4055_v44 }
 0x389   : > { %v1038_v49 = vpop.f32.mrb[20].mxu0  ;;  %v1111_v53 = vpop.f32.mrb[20].mxu1 }
 0x38a   : > { %v4057_v50 = vadd.f32 %v1038_v49, %v797_v35  ;;  %v4059_v54 = vadd.f32 %v1111_v53, %v805_v36  ;;  %v1040_v61 = vpop.f32.mrb[21].mxu0  ;;  %v1113_v23 = vpop.f32.mrb[21].mxu1  ;;  %v1009_v53 = vadd.f32 %v4013_v33, %v797_v35 }
 0x38b   : > { %v4061_v62 = vadd.f32 %v1040_v61, %v801_v39  ;;  %v4063_v24 = vadd.f32 %v1113_v23, %v809_v40  ;;  %v1042_v27 = vpop.f32.mrb[22].mxu0  ;;  %v1115_v30 = vpop.f32.mrb[22].mxu1  ;;  %v1011_v61 = vadd.f32 %v1010_v37, %v801_v39 }
 0x38c   : > { %4507 = vst [vmem:[#allocation35_spill] sm:$0xff] %v4057_v50  ;;  %4508 = vst [vmem:[#allocation36_spill] sm:$0xff] %v4059_v54  ;;  %v4065_v29 = vadd.f32 %v1042_v27, %v797_v35  ;;  %v4067_v31 = vadd.f32 %v1115_v30, %v805_v36  ;;  %v1044_v41 = vpop.f32.mrb[23].mxu0  ;;  %v1117_v44 = vpop.f32.mrb[23].mxu1  ;;  %v1082_v54 = vadd.f32 %v4015_v34, %v805_v36 }
 0x38d   : > { %4509 = vst [vmem:[#allocation37_spill] sm:$0xff] %v4061_v62  ;;  %4510 = vst [vmem:[#allocation38_spill] sm:$0xff] %v4063_v24  ;;  %v4069_v32 = vadd.f32 %v1044_v41, %v801_v39  ;;  %v4071_v49 = vadd.f32 %v1117_v44, %v809_v40  ;;  %v1084_v62 = vadd.f32 %v1083_v38, %v809_v40 }
 0x38e   : > { %4511 = vst [vmem:[#allocation39_spill] sm:$0xff] %v4065_v29  ;;  %4512 = vst [vmem:[#allocation40_spill] sm:$0xff] %v4067_v31 }
 0x38f   : > { %4513 = vst [vmem:[#allocation41_spill] sm:$0xff] %v4069_v32  ;;  %4514 = vst [vmem:[#allocation42_spill] sm:$0xff] %v4071_v49 }
 0x391   : > { %v1385_v23 = vpop.f32.mrb[24].mxu0  ;;  %v1426_v24 = vpop.f32.mrb[24].mxu1 }
 0x392   : > { %v1433_v50 = vadd.f32 %v1385_v23, %v1009_v53  ;;  %v1435_v28 = vadd.f32 %v1426_v24, %v1082_v54  ;;  %v1387_v27 = vpop.f32.mrb[25].mxu0  ;;  %v1428_v29 = vpop.f32.mrb[25].mxu1 }
 0x393   : > { %v1434_v30 = vadd.f32 %v1387_v27, %v1011_v61  ;;  %v1436_v31 = vadd.f32 %v1428_v29, %v1084_v62  ;;  %v1389_v2 = vpop.f32.mrb[26].mxu0  ;;  %v1430_v63 = vpop.f32.mrb[26].mxu1  ;;  %v4515_v61 = vmov 0  }
 0x394   : > { %v2706_v41 = vmul.f32 -1.442695, %v1433_v50  ;;  %v2708_v32 = vmul.f32 -1.442695, %v1435_v28  ;;  %v1390_v44 = vpop.f32.mrb[27].mxu0  ;;  %v1431_v49 = vpop.f32.mrb[27].mxu1 }
 0x395   : > { %v2707_v58 = vmul.f32 -1.442695, %v1434_v30  ;;  %v2709_v35 = vmul.f32 -1.442695, %v1436_v31 }
 0x396   : > { %3087 = vpow2.f32 %v2706_v41 }
 0x397   : > { %3089 = vpow2.f32 %v2708_v32 }
 0x398   : > { %3091 = vpow2.f32 %v2707_v58 }
 0x3a0   : > { %v3088_v33 = vpop.eup %3087 }
 0x3a1   : > { %v3090_v34 = vpop.eup %3089  ;;  %v1449_v39 = vadd.f32 1.0, %v3088_v33 }
 0x3a2   : > { %v3092_v36 = vpop.eup %3091  ;;  %v1451_v37 = vadd.f32 1.0, %v3090_v34 }
 0x3a3   : > { %v1450_v38 = vadd.f32 1.0, %v3092_v36 }
 0x3a4   : > { %3093 = vrcp.f32 %v1451_v37 }
 0x3a5   : > { %3095 = vpow2.f32 %v2709_v35 }
 0x3a6   : > { %3097 = vrcp.f32 %v1450_v38 }
 0x3a7   : > { %3099 = vrcp.f32 %v1449_v39 }
 0x3ae   : > { %v3094_v40 = vpop.eup %3093 }
 0x3af   : > { %v3096_v63 = vpop.eup %3095  ;;  %v1461_v2 = vmul.f32 2.0, %v3094_v40 }
 0x3b0   : > { %v3098_v28 = vpop.eup %3097  ;;  %v1452_v62 = vadd.f32 1.0, %v3096_v63 }
 0x3b1   : > { %v2710_v29 = vadd.f32 -1.0, %v1461_v2  ;;  %v3100_v50 = vpop.eup %3099  ;;  %v1463_v58 = vmul.f32 0.0, %v3098_v28 }
 0x3b2   : > { %3101 = vrcp.f32 %v1452_v62 }
 0x3b3   : > { %v1464_v32 = vmul.f32 %v3100_v50, %v2710_v29 }
 0x3b5   : > { %v4075_v54 = vadd.f32 %v1464_v32, %v1463_v58 }
 0x3b7   : > { %3103 = vtanh.f32 %v4075_v54 }
 0x3bc   : > { %v3102_v24 = vpop.eup %3101 }
 0x3c1   : > { %v3104_v31 = vpop.eup %3103 }
 0x3c2   : > { %v1467_v49 = vmul.f32 %v3104_v31, %v3102_v24 }
 0x3c4   : > { %v1475_v53 = vpack.c.bf16 %v1467_v49, %v1467_v49 }
 0x3c6   : > { %1509 = vmatmul.mubr.bf16.vlgmr.msra.gmra.mrb[28].mxu0 %v1475_v53  ;;  %1550 = vmatmul.mubr.bf16.vlgmr.msra.gmra.mrb[28].mxu1 %v1475_v53 }
 0x3c7   : > { %1602 = vmatpush1.bf16.msra.mxu0 %v3876_v43  ;;  %1643 = vmatpush1.bf16.msra.mxu1 %v3874_v42 }
 0x3c8   : > { %1603 = vmatprep.subr.bf16.mxu0 %v3880_v47  ;;  %1644 = vmatprep.subr.bf16.mxu1 %v3878_v46 }
 0x3c9   : > { %1633 = vmatprep.mubr.bf16.mxu0 %v4515_v61  ;;  %1674 = vmatprep.mubr.bf16.mxu1 %v4515_v61 }
 0x3cb   : > { %1604 = vmatpush1.bf16.msra.mxu0 %v3886_v56  ;;  %1645 = vmatpush1.bf16.msra.mxu1 %v3884_v55 }
 0x3cc   : > { %1605 = vmatprep.subr.bf16.mxu0 %v3892_v60  ;;  %1646 = vmatprep.subr.bf16.mxu1 %v3890_v59 }
 0x3cf   : > { %1606 = vmatpush1.bf16.msra.mxu0 %v3900_v1  ;;  %1647 = vmatpush1.bf16.msra.mxu1 %v3898_v0 }
 0x3d0   : > { %1607 = vmatprep.subr.bf16.mxu0 %v3906_v4  ;;  %1648 = vmatprep.subr.bf16.mxu1 %v3904_v3 }
 0x3d3   : > { %1608 = vmatpush1.bf16.msra.mxu0 %v3912_v6  ;;  %1649 = vmatpush1.bf16.msra.mxu1 %v3910_v5 }
 0x3d4   : > { %1609 = vmatprep.subr.bf16.mxu0 %v3918_v8  ;;  %1650 = vmatprep.subr.bf16.mxu1 %v3916_v7 }
 0x3d7   : > { %1610 = vmatpush1.bf16.msra.mxu0 %v3926_v10  ;;  %1651 = vmatpush1.bf16.msra.mxu1 %v3924_v9 }
 0x3d8   : > { %1611 = vmatprep.subr.bf16.mxu0 %v3932_v12  ;;  %1652 = vmatprep.subr.bf16.mxu1 %v3930_v11 }
 0x3db   : > { %1612 = vmatpush1.bf16.msra.mxu0 %v3938_v14  ;;  %1653 = vmatpush1.bf16.msra.mxu1 %v3936_v13 }
 0x3dc   : > { %1613 = vmatprep.subr.bf16.mxu0 %v3944_v16  ;;  %1654 = vmatprep.subr.bf16.mxu1 %v3942_v15 }
 0x3df   : > { %1614 = vmatpush1.bf16.msra.mxu0 %v3952_v18  ;;  %1655 = vmatpush1.bf16.msra.mxu1 %v3950_v17 }
 0x3e0   : > { %1615 = vmatprep.subr.bf16.mxu0 %v3958_v20  ;;  %1656 = vmatprep.subr.bf16.mxu1 %v3956_v19 }
 0x3e3   : > { %1616 = vmatpush1.bf16.msra.mxu0 %v3964_v22  ;;  %1657 = vmatpush1.bf16.msra.mxu1 %v3962_v21 }
 0x3e4   : > { %1726 = vmatprep.subr.bf16.mxu0 %v3865_v26  ;;  %1767 = vmatprep.subr.bf16.mxu1 %v3863_v25 }
 0x499   : > { %v1510_v23 = vpop.f32.mrb[28].mxu0  ;;  %v1551_v27 = vpop.f32.mrb[28].mxu1 }
 0x49a   : > { %v1558_v30 = vadd.f32 %v1510_v23, %v4017_v45  ;;  %v1560_v41 = vadd.f32 %v1551_v27, %v4019_v48  ;;  %v1512_v44 = vpop.f32.mrb[29].mxu0  ;;  %v1553_v33 = vpop.f32.mrb[29].mxu1 }
 0x49b   : > { %v1559_v34 = vadd.f32 %v1512_v44, %v4021_v51  ;;  %v1561_v35 = vadd.f32 %v1553_v33, %v4023_v52  ;;  %v1514_v36 = vpop.f32.mrb[30].mxu0  ;;  %v1555_v37 = vpop.f32.mrb[30].mxu1 }
 0x49c   : > { %v2711_v38 = vmul.f32 -1.442695, %v1558_v30  ;;  %v2713_v39 = vmul.f32 -1.442695, %v1560_v41  ;;  %v1515_v40 = vpop.f32.mrb[31].mxu0  ;;  %v1556_v63 = vpop.f32.mrb[31].mxu1 }
 0x49d   : > { %v2712_v2 = vmul.f32 -1.442695, %v1559_v34  ;;  %v2714_v29 = vmul.f32 -1.442695, %v1561_v35  ;;  %v4516_v37 = vld [vmem:[#allocation20_spill] sm:$0xff]  ;;  %v4517_v63 = vld [vmem:[#allocation21_spill] sm:$0xff] }
 0x49e   : > { %3105 = vpow2.f32 %v2711_v38 }
 0x49f   : > { %3107 = vpow2.f32 %v2713_v39 }
 0x4a0   : > { %3109 = vpow2.f32 %v2712_v2 }
 0x4a8   : > { %v3106_v28 = vpop.eup %3105 }
 0x4a9   : > { %v3108_v45 = vpop.eup %3107  ;;  %v1574_v32 = vadd.f32 1.0, %v3106_v28  ;;  %v4518_v28 = vld [vmem:[#allocation22_spill] sm:$0xff] }
 0x4aa   : > { %v3110_v48 = vpop.eup %3109  ;;  %v1576_v50 = vadd.f32 1.0, %v3108_v45 }
 0x4ab   : > { %v1575_v62 = vadd.f32 1.0, %v3110_v48 }
 0x4ac   : > { %3111 = vrcp.f32 %v1576_v50 }
 0x4ad   : > { %3113 = vpow2.f32 %v2714_v29 }
 0x4ae   : > { %3115 = vrcp.f32 %v1575_v62 }
 0x4af   : > { %3117 = vrcp.f32 %v1574_v32 }
 0x4b6   : > { %v3112_v51 = vpop.eup %3111 }
 0x4b7   : > { %v3114_v52 = vpop.eup %3113  ;;  %v1586_v58 = vmul.f32 2.0, %v3112_v51 }
 0x4b8   : > { %v3116_v24 = vpop.eup %3115  ;;  %v1577_v53 = vadd.f32 1.0, %v3114_v52 }
 0x4b9   : > { %v2715_v31 = vadd.f32 -1.0, %v1586_v58  ;;  %v3118_v49 = vpop.eup %3117  ;;  %v1588_v27 = vmul.f32 %v3116_v24, %v4075_v54 }
 0x4ba   : > { %3119 = vrcp.f32 %v1577_v53 }
 0x4bb   : > { %v1589_v23 = vmul.f32 %v3118_v49, %v2715_v31 }
 0x4bd   : > { %v4117_v30 = vadd.f32 %v1589_v23, %v1588_v27 }
 0x4bf   : > { %3121 = vtanh.f32 %v4117_v30 }
 0x4c4   : > { %v3120_v41 = vpop.eup %3119 }
 0x4c9   : > { %v3122_v44 = vpop.eup %3121 }
 0x4ca   : > { %v1592_v33 = vmul.f32 %v3122_v44, %v3120_v41 }
 0x4cc   : > { %v1600_v34 = vpack.c.bf16 %v1592_v33, %v1592_v33 }
 0x4ce   : > { %1634 = vmatmul.mubr.bf16.vlgmr.msra.gmra.mrb[32].mxu0 %v1600_v34  ;;  %1675 = vmatmul.mubr.bf16.vlgmr.msra.gmra.mrb[32].mxu1 %v1600_v34 }
 0x4cf   : > { %1727 = vmatpush1.bf16.msra.mxu0 %v3876_v43  ;;  %1768 = vmatpush1.bf16.msra.mxu1 %v3874_v42 }
 0x4d0   : > { %1728 = vmatprep.subr.bf16.mxu0 %v3880_v47  ;;  %1769 = vmatprep.subr.bf16.mxu1 %v3878_v46 }
 0x4d1   : > { %1758 = vmatprep.mubr.bf16.mxu0 %v4515_v61  ;;  %1799 = vmatprep.mubr.bf16.mxu1 %v4515_v61 }
 0x4d3   : > { %1729 = vmatpush1.bf16.msra.mxu0 %v3886_v56  ;;  %1770 = vmatpush1.bf16.msra.mxu1 %v3884_v55 }
 0x4d4   : > { %1730 = vmatprep.subr.bf16.mxu0 %v3892_v60  ;;  %1771 = vmatprep.subr.bf16.mxu1 %v3890_v59 }
 0x4d7   : > { %1731 = vmatpush1.bf16.msra.mxu0 %v3900_v1  ;;  %1772 = vmatpush1.bf16.msra.mxu1 %v3898_v0 }
 0x4d8   : > { %1732 = vmatprep.subr.bf16.mxu0 %v3906_v4  ;;  %1773 = vmatprep.subr.bf16.mxu1 %v3904_v3 }
 0x4db   : > { %1733 = vmatpush1.bf16.msra.mxu0 %v3912_v6  ;;  %1774 = vmatpush1.bf16.msra.mxu1 %v3910_v5 }
 0x4dc   : > { %1734 = vmatprep.subr.bf16.mxu0 %v3918_v8  ;;  %1775 = vmatprep.subr.bf16.mxu1 %v3916_v7 }
 0x4df   : > { %1735 = vmatpush1.bf16.msra.mxu0 %v3926_v10  ;;  %1776 = vmatpush1.bf16.msra.mxu1 %v3924_v9 }
 0x4e0   : > { %1736 = vmatprep.subr.bf16.mxu0 %v3932_v12  ;;  %1777 = vmatprep.subr.bf16.mxu1 %v3930_v11 }
 0x4e3   : > { %1737 = vmatpush1.bf16.msra.mxu0 %v3938_v14  ;;  %1778 = vmatpush1.bf16.msra.mxu1 %v3936_v13 }
 0x4e4   : > { %1738 = vmatprep.subr.bf16.mxu0 %v3944_v16  ;;  %1779 = vmatprep.subr.bf16.mxu1 %v3942_v15 }
 0x4e7   : > { %1739 = vmatpush1.bf16.msra.mxu0 %v3952_v18  ;;  %1780 = vmatpush1.bf16.msra.mxu1 %v3950_v17 }
 0x4e8   : > { %1740 = vmatprep.subr.bf16.mxu0 %v3958_v20  ;;  %1781 = vmatprep.subr.bf16.mxu1 %v3956_v19 }
 0x4eb   : > { %1741 = vmatpush1.bf16.msra.mxu0 %v3964_v22  ;;  %1782 = vmatpush1.bf16.msra.mxu1 %v3962_v21 }
 0x4ec   : > { %1851 = vmatprep.subr.bf16.mxu0 %v3865_v26  ;;  %1892 = vmatprep.subr.bf16.mxu1 %v3863_v25 }
 0x5a1   : > { %v1635_v54 = vpop.f32.mrb[32].mxu0  ;;  %v1676_v35 = vpop.f32.mrb[32].mxu1 }
 0x5a2   : > { %v1683_v36 = vadd.f32 %v1635_v54, %v4025_v57  ;;  %v1685_v38 = vadd.f32 %v1676_v35, %v4516_v37  ;;  %v1637_v39 = vpop.f32.mrb[33].mxu0  ;;  %v1678_v40 = vpop.f32.mrb[33].mxu1 }
 0x5a3   : > { %v1684_v2 = vadd.f32 %v1637_v39, %v4517_v63  ;;  %v1686_v45 = vadd.f32 %v1678_v40, %v4518_v28  ;;  %v1639_v29 = vpop.f32.mrb[34].mxu0  ;;  %v1680_v48 = vpop.f32.mrb[34].mxu1 }
 0x5a4   : > { %v2716_v50 = vmul.f32 -1.442695, %v1683_v36  ;;  %v2718_v62 = vmul.f32 -1.442695, %v1685_v38  ;;  %v1640_v32 = vpop.f32.mrb[35].mxu0  ;;  %v1681_v51 = vpop.f32.mrb[35].mxu1 }
 0x5a5   : > { %v2717_v52 = vmul.f32 -1.442695, %v1684_v2  ;;  %v2719_v24 = vmul.f32 -1.442695, %v1686_v45  ;;  %v4519_v45 = vld [vmem:[#allocation23_spill] sm:$0xff]  ;;  %v4520_v48 = vld [vmem:[#allocation24_spill] sm:$0xff] }
 0x5a6   : > { %3123 = vpow2.f32 %v2716_v50  ;;  %v4521_v51 = vld [vmem:[#allocation25_spill] sm:$0xff] }
 0x5a7   : > { %3125 = vpow2.f32 %v2718_v62 }
 0x5a8   : > { %3127 = vpow2.f32 %v2717_v52 }
 0x5b0   : > { %v3124_v58 = vpop.eup %3123 }
 0x5b1   : > { %v3126_v57 = vpop.eup %3125  ;;  %v1699_v23 = vadd.f32 1.0, %v3124_v58  ;;  %v4522_v58 = vld [vmem:[#allocation26_spill] sm:$0xff] }
 0x5b2   : > { %v3128_v31 = vpop.eup %3127  ;;  %v1701_v49 = vadd.f32 1.0, %v3126_v57 }
 0x5b3   : > { %v1700_v53 = vadd.f32 1.0, %v3128_v31 }
 0x5b4   : > { %3129 = vrcp.f32 %v1701_v49 }
 0x5b5   : > { %3131 = vpow2.f32 %v2719_v24 }
 0x5b6   : > { %3133 = vrcp.f32 %v1700_v53 }
 0x5b7   : > { %3135 = vrcp.f32 %v1699_v23 }
 0x5be   : > { %v3130_v27 = vpop.eup %3129 }
 0x5bf   : > { %v3132_v41 = vpop.eup %3131  ;;  %v1711_v44 = vmul.f32 2.0, %v3130_v27 }
 0x5c0   : > { %v3134_v33 = vpop.eup %3133  ;;  %v1702_v35 = vadd.f32 1.0, %v3132_v41 }
 0x5c1   : > { %v2720_v34 = vadd.f32 -1.0, %v1711_v44  ;;  %v3136_v54 = vpop.eup %3135  ;;  %v1713_v37 = vmul.f32 %v3134_v33, %v4117_v30 }
 0x5c2   : > { %3137 = vrcp.f32 %v1702_v35 }
 0x5c3   : > { %v1714_v36 = vmul.f32 %v3136_v54, %v2720_v34 }
 0x5c5   : > { %v4159_v38 = vadd.f32 %v1714_v36, %v1713_v37 }
 0x5c7   : > { %3139 = vtanh.f32 %v4159_v38 }
 0x5cc   : > { %v3138_v39 = vpop.eup %3137 }
 0x5d1   : > { %v3140_v40 = vpop.eup %3139 }
 0x5d2   : > { %v1717_v63 = vmul.f32 %v3140_v40, %v3138_v39 }
 0x5d4   : > { %v1725_v2 = vpack.c.bf16 %v1717_v63, %v1717_v63 }
 0x5d6   : > { %1759 = vmatmul.mubr.bf16.vlgmr.msra.gmra.mrb[36].mxu0 %v1725_v2  ;;  %1800 = vmatmul.mubr.bf16.vlgmr.msra.gmra.mrb[36].mxu1 %v1725_v2 }
 0x5d7   : > { %1852 = vmatpush1.bf16.msra.mxu0 %v3876_v43  ;;  %1893 = vmatpush1.bf16.msra.mxu1 %v3874_v42 }
 0x5d8   : > { %1853 = vmatprep.subr.bf16.mxu0 %v3880_v47  ;;  %1894 = vmatprep.subr.bf16.mxu1 %v3878_v46 }
 0x5d9   : > { %1883 = vmatprep.mubr.bf16.mxu0 %v4515_v61  ;;  %1924 = vmatprep.mubr.bf16.mxu1 %v4515_v61 }
 0x5db   : > { %1854 = vmatpush1.bf16.msra.mxu0 %v3886_v56  ;;  %1895 = vmatpush1.bf16.msra.mxu1 %v3884_v55 }
 0x5dc   : > { %1855 = vmatprep.subr.bf16.mxu0 %v3892_v60  ;;  %1896 = vmatprep.subr.bf16.mxu1 %v3890_v59 }
 0x5df   : > { %1856 = vmatpush1.bf16.msra.mxu0 %v3900_v1  ;;  %1897 = vmatpush1.bf16.msra.mxu1 %v3898_v0 }
 0x5e0   : > { %1857 = vmatprep.subr.bf16.mxu0 %v3906_v4  ;;  %1898 = vmatprep.subr.bf16.mxu1 %v3904_v3 }
 0x5e3   : > { %1858 = vmatpush1.bf16.msra.mxu0 %v3912_v6  ;;  %1899 = vmatpush1.bf16.msra.mxu1 %v3910_v5 }
 0x5e4   : > { %1859 = vmatprep.subr.bf16.mxu0 %v3918_v8  ;;  %1900 = vmatprep.subr.bf16.mxu1 %v3916_v7 }
 0x5e7   : > { %1860 = vmatpush1.bf16.msra.mxu0 %v3926_v10  ;;  %1901 = vmatpush1.bf16.msra.mxu1 %v3924_v9 }
 0x5e8   : > { %1861 = vmatprep.subr.bf16.mxu0 %v3932_v12  ;;  %1902 = vmatprep.subr.bf16.mxu1 %v3930_v11 }
 0x5eb   : > { %1862 = vmatpush1.bf16.msra.mxu0 %v3938_v14  ;;  %1903 = vmatpush1.bf16.msra.mxu1 %v3936_v13 }
 0x5ec   : > { %1863 = vmatprep.subr.bf16.mxu0 %v3944_v16  ;;  %1904 = vmatprep.subr.bf16.mxu1 %v3942_v15 }
 0x5ef   : > { %1864 = vmatpush1.bf16.msra.mxu0 %v3952_v18  ;;  %1905 = vmatpush1.bf16.msra.mxu1 %v3950_v17 }
 0x5f0   : > { %1865 = vmatprep.subr.bf16.mxu0 %v3958_v20  ;;  %1906 = vmatprep.subr.bf16.mxu1 %v3956_v19 }
 0x5f3   : > { %1866 = vmatpush1.bf16.msra.mxu0 %v3964_v22  ;;  %1907 = vmatpush1.bf16.msra.mxu1 %v3962_v21 }
 0x5f4   : > { %1976 = vmatprep.subr.bf16.mxu0 %v3865_v26  ;;  %2017 = vmatprep.subr.bf16.mxu1 %v3863_v25 }
 0x6a9   : > { %v1760_v30 = vpop.f32.mrb[36].mxu0  ;;  %v1801_v28 = vpop.f32.mrb[36].mxu1 }
 0x6aa   : > { %v1808_v29 = vadd.f32 %v1760_v30, %v4519_v45  ;;  %v1810_v50 = vadd.f32 %v1801_v28, %v4520_v48  ;;  %v1762_v62 = vpop.f32.mrb[37].mxu0  ;;  %v1803_v32 = vpop.f32.mrb[37].mxu1 }
 0x6ab   : > { %v1809_v52 = vadd.f32 %v1762_v62, %v4521_v51  ;;  %v1811_v57 = vadd.f32 %v1803_v32, %v4522_v58  ;;  %v1764_v24 = vpop.f32.mrb[38].mxu0  ;;  %v1805_v31 = vpop.f32.mrb[38].mxu1 }
 0x6ac   : > { %v2721_v49 = vmul.f32 -1.442695, %v1808_v29  ;;  %v2723_v53 = vmul.f32 -1.442695, %v1810_v50  ;;  %v1765_v23 = vpop.f32.mrb[39].mxu0  ;;  %v1806_v26 = vpop.f32.mrb[39].mxu1 }
 0x6ad   : > { %v2722_v27 = vmul.f32 -1.442695, %v1809_v52  ;;  %v2724_v44 = vmul.f32 -1.442695, %v1811_v57 }
 0x6ae   : > { %3141 = vpow2.f32 %v2721_v49 }
 0x6af   : > { %3143 = vpow2.f32 %v2723_v53 }
 0x6b0   : > { %3145 = vpow2.f32 %v2722_v27 }
 0x6b8   : > { %v3142_v25 = vpop.eup %3141 }
 0x6b9   : > { %v3144_v41 = vpop.eup %3143  ;;  %v1824_v35 = vadd.f32 1.0, %v3142_v25  ;;  %v4250_v25 = vld [vmem:[#allocation11] ss:$16 sps:$4 sm:$0xff]  }
 0x6ba   : > { %v3146_v33 = vpop.eup %3145  ;;  %v1826_v34 = vadd.f32 1.0, %v3144_v41  ;;  %v4253_v41 = vld [vmem:[#allocation11 + $0x8] ss:$16 sps:$4 sm:$0xff]  }
 0x6bb   : > { %v1825_v54 = vadd.f32 1.0, %v3146_v33  ;;  %v4259_v33 = vld [vmem:[#allocation11 + $0x2c] ss:$16 sps:$4 sm:$0xff]  }
 0x6bc   : > { %3147 = vrcp.f32 %v1826_v34  ;;  %v4264_v34 = vld [vmem:[#allocation11 + $0x20] ss:$16 sps:$4 sm:$0xff]  }
 0x6bd   : > { %3149 = vpow2.f32 %v2724_v44  ;;  %v4256_v44 = vld [vmem:[#allocation11 + $0x24] ss:$16 sps:$4 sm:$0xff]  }
 0x6be   : > { %3151 = vrcp.f32 %v1825_v54  ;;  %v4267_v54 = vld [vmem:[#allocation11 + $0x28] ss:$16 sps:$4 sm:$0xff]  }
 0x6bf   : > { %3153 = vrcp.f32 %v1824_v35  ;;  %v4270_v35 = vld [vmem:[#allocation11 + $0x44] ss:$16 sps:$4 sm:$0xff]  }
 0x6c6   : > { %v3148_v36 = vpop.eup %3147 }
 0x6c7   : > { %v3150_v37 = vpop.eup %3149  ;;  %v1836_v39 = vmul.f32 2.0, %v3148_v36  ;;  %v4273_v36 = vld [vmem:[#allocation11 + $0x4c] ss:$16 sps:$4 sm:$0xff]  }
 0x6c8   : > { %v3152_v40 = vpop.eup %3151  ;;  %v1827_v30 = vadd.f32 1.0, %v3150_v37  ;;  %v4276_v37 = vld [vmem:[#allocation11 + $0x40] ss:$16 sps:$4 sm:$0xff]  }
 0x6c9   : > { %v2725_v63 = vadd.f32 -1.0, %v1836_v39  ;;  %v3154_v2 = vpop.eup %3153  ;;  %v1838_v45 = vmul.f32 %v3152_v40, %v4159_v38  ;;  %v4279_v39 = vld [vmem:[#allocation11 + $0x48] ss:$16 sps:$4 sm:$0xff]   ;;  %v4282_v40 = vld [vmem:[#allocation11 + $0x64] ss:$16 sps:$4 sm:$0xff]  }
 0x6ca   : > { %3155 = vrcp.f32 %v1827_v30  ;;  %v4291_v30 = vld [vmem:[#allocation11 + $0x68] ss:$16 sps:$4 sm:$0xff]  }
 0x6cb   : > { %v1839_v28 = vmul.f32 %v3154_v2, %v2725_v63  ;;  %v4285_v63 = vld [vmem:[#allocation11 + $0x6c] ss:$16 sps:$4 sm:$0xff]   ;;  %v4288_v2 = vld [vmem:[#allocation11 + $0x60] ss:$16 sps:$4 sm:$0xff]  }
 0x6cd   : > { %v4201_v29 = vadd.f32 %v1839_v28, %v1838_v45  ;;  %v4294_v28 = vld [vmem:[#allocation11 + $0x84] ss:$16 sps:$4 sm:$0xff]   ;;  %v4297_v45 = vld [vmem:[#allocation11 + $0x8c] ss:$16 sps:$4 sm:$0xff]  }
 0x6cf   : > { %3157 = vtanh.f32 %v4201_v29 }
 0x6d4   : > { %v3156_v48 = vpop.eup %3155 }
 0x6d9   : > { %v3158_v50 = vpop.eup %3157 }
 0x6da   : > { %v1842_v62 = vmul.f32 %v3158_v50, %v3156_v48  ;;  %v4303_v48 = vld [vmem:[#allocation11 + $0x88] ss:$16 sps:$4 sm:$0xff]   ;;  %v4306_v50 = vld [vmem:[#allocation11 + $0xa4] ss:$16 sps:$4 sm:$0xff]  }
 0x6dc   : > { %v1850_v32 = vpack.c.bf16 %v1842_v62, %v1842_v62  ;;  %v4309_v62 = vld [vmem:[#allocation11 + $0xac] ss:$16 sps:$4 sm:$0xff]  }
 0x6de   : > { %1884 = vmatmul.mubr.bf16.vlgmr.msra.gmra.mrb[40].mxu0 %v1850_v32  ;;  %1925 = vmatmul.mubr.bf16.vlgmr.msra.gmra.mrb[40].mxu1 %v1850_v32  ;;  %v4312_v32 = vld [vmem:[#allocation11 + $0xa0] ss:$16 sps:$4 sm:$0xff]  }
 0x6df   : > { %1977 = vmatpush1.bf16.msra.mxu0 %v3876_v43  ;;  %2018 = vmatpush1.bf16.msra.mxu1 %v3874_v42  ;;  %v4236_v42 = vld [vmem:[#allocation11 + $0x4] ss:$16 sps:$4 sm:$0xff]   ;;  %v4239_v43 = vld [vmem:[#allocation11 + $0xc] ss:$16 sps:$4 sm:$0xff]  }
 0x6e0   : > { %1978 = vmatprep.subr.bf16.mxu0 %v3880_v47  ;;  %2019 = vmatprep.subr.bf16.mxu1 %v3878_v46 }
 0x6e1   : > { %2008 = vmatprep.mubr.bf16.mxu0 %v4515_v61  ;;  %2049 = vmatprep.mubr.bf16.mxu1 %v4515_v61 }
 0x6e3   : > { %1979 = vmatpush1.bf16.msra.mxu0 %v3886_v56  ;;  %2020 = vmatpush1.bf16.msra.mxu1 %v3884_v55  ;;  %v4523_v55 = vld [vmem:[#allocation27_spill] sm:$0xff] }
 0x6e4   : > { %1980 = vmatprep.subr.bf16.mxu0 %v3892_v60  ;;  %2021 = vmatprep.subr.bf16.mxu1 %v3890_v59  ;;  %v4524_v59 = vld [vmem:[#allocation28_spill] sm:$0xff] }
 0x6e7   : > { %1981 = vmatpush1.bf16.msra.mxu0 %v3900_v1  ;;  %2022 = vmatpush1.bf16.msra.mxu1 %v3898_v0 }
 0x6e8   : > { %1982 = vmatprep.subr.bf16.mxu0 %v3906_v4  ;;  %2023 = vmatprep.subr.bf16.mxu1 %v3904_v3  ;;  %v4525_v3 = vld [vmem:[#allocation29_spill] sm:$0xff] }
 0x6eb   : > { %1983 = vmatpush1.bf16.msra.mxu0 %v3912_v6  ;;  %2024 = vmatpush1.bf16.msra.mxu1 %v3910_v5  ;;  %v4526_v5 = vld [vmem:[#allocation30_spill] sm:$0xff] }
 0x6ec   : > { %1984 = vmatprep.subr.bf16.mxu0 %v3918_v8  ;;  %2025 = vmatprep.subr.bf16.mxu1 %v3916_v7 }
 0x6ef   : > { %1985 = vmatpush1.bf16.msra.mxu0 %v3926_v10  ;;  %2026 = vmatpush1.bf16.msra.mxu1 %v3924_v9 }
 0x6f0   : > { %1986 = vmatprep.subr.bf16.mxu0 %v3932_v12  ;;  %2027 = vmatprep.subr.bf16.mxu1 %v3930_v11 }
 0x6f3   : > { %1987 = vmatpush1.bf16.msra.mxu0 %v3938_v14  ;;  %2028 = vmatpush1.bf16.msra.mxu1 %v3936_v13 }
 0x6f4   : > { %1988 = vmatprep.subr.bf16.mxu0 %v3944_v16  ;;  %2029 = vmatprep.subr.bf16.mxu1 %v3942_v15 }
 0x6f7   : > { %1989 = vmatpush1.bf16.msra.mxu0 %v3952_v18  ;;  %2030 = vmatpush1.bf16.msra.mxu1 %v3950_v17 }
 0x6f8   : > { %1990 = vmatprep.subr.bf16.mxu0 %v3958_v20  ;;  %2031 = vmatprep.subr.bf16.mxu1 %v3956_v19 }
 0x6fb   : > { %1991 = vmatpush1.bf16.msra.mxu0 %v3964_v22  ;;  %2032 = vmatpush1.bf16.msra.mxu1 %v3962_v21 }
 0x6fc   : > { %2101 = vmatprep.subr.bf16.mxu0 %v4236_v42  ;;  %2142 = vmatprep.subr.bf16.mxu1 %v4239_v43 }
 0x7b1   : > { %v1885_v46 = vpop.f32.mrb[40].mxu0  ;;  %v1926_v47 = vpop.f32.mrb[40].mxu1 }
 0x7b2   : > { %v1933_v56 = vadd.f32 %v1885_v46, %v4523_v55  ;;  %v1935_v60 = vadd.f32 %v1926_v47, %v4524_v59  ;;  %v1887_v0 = vpop.f32.mrb[41].mxu0  ;;  %v1928_v1 = vpop.f32.mrb[41].mxu1  ;;  %v4315_v46 = vld [vmem:[#allocation11 + $0xa8] ss:$16 sps:$4 sm:$0xff]   ;;  %v4318_v47 = vld [vmem:[#allocation11 + $0xc4] ss:$16 sps:$4 sm:$0xff]  }
 0x7b3   : > { %v1934_v4 = vadd.f32 %v1887_v0, %v4525_v3  ;;  %v1936_v6 = vadd.f32 %v1928_v1, %v4526_v5  ;;  %v1889_v7 = vpop.f32.mrb[42].mxu0  ;;  %v1930_v8 = vpop.f32.mrb[42].mxu1  ;;  %v4321_v55 = vld [vmem:[#allocation11 + $0xcc] ss:$16 sps:$4 sm:$0xff]   ;;  %v4327_v59 = vld [vmem:[#allocation11 + $0xc8] ss:$16 sps:$4 sm:$0xff]  }
 0x7b4   : > { %v2726_v9 = vmul.f32 -1.442695, %v1933_v56  ;;  %v2728_v10 = vmul.f32 -1.442695, %v1935_v60  ;;  %v1890_v11 = vpop.f32.mrb[43].mxu0  ;;  %v1931_v12 = vpop.f32.mrb[43].mxu1 }
 0x7b5   : > { %v2727_v13 = vmul.f32 -1.442695, %v1934_v4  ;;  %v2729_v16 = vmul.f32 -1.442695, %v1936_v6  ;;  %v4324_v56 = vld [vmem:[#allocation11 + $0xc0] ss:$16 sps:$4 sm:$0xff]  }
 0x7b6   : > { %3159 = vpow2.f32 %v2726_v9  ;;  %v4330_v60 = vld [vmem:[#allocation11 + $0xe4] ss:$16 sps:$4 sm:$0xff]   ;;  %v4333_v0 = vld [vmem:[#allocation11 + $0xec] ss:$16 sps:$4 sm:$0xff]   ;;  %v4336_v1 = vld [vmem:[#allocation11 + $0xe0] ss:$16 sps:$4 sm:$0xff]  }
 0x7b7   : > { %3161 = vpow2.f32 %v2728_v10  ;;  %v4339_v3 = vld [vmem:[#allocation11 + $0xe8] ss:$16 sps:$4 sm:$0xff]   ;;  %v4528_v8 = vld [vmem:[#allocation32_spill] sm:$0xff] }
 0x7b8   : > { %3163 = vpow2.f32 %v2727_v13  ;;  %v4527_v6 = vld [vmem:[#allocation31_spill] sm:$0xff]  ;;  %v4529_v12 = vld [vmem:[#allocation33_spill] sm:$0xff] }
 0x7c0   : > { %v3160_v14 = vpop.eup %3159 }
 0x7c1   : > { %v3162_v15 = vpop.eup %3161  ;;  %v1949_v20 = vadd.f32 1.0, %v3160_v14  ;;  %v4530_v14 = vld [vmem:[#allocation34_spill] sm:$0xff] }
 0x7c2   : > { %v3164_v17 = vpop.eup %3163  ;;  %v1951_v18 = vadd.f32 1.0, %v3162_v15 }
 0x7c3   : > { %v1950_v19 = vadd.f32 1.0, %v3164_v17 }
 0x7c4   : > { %3165 = vrcp.f32 %v1951_v18 }
 0x7c5   : > { %3167 = vpow2.f32 %v2729_v16 }
 0x7c6   : > { %3169 = vrcp.f32 %v1950_v19 }
 0x7c7   : > { %3171 = vrcp.f32 %v1949_v20 }
 0x7ce   : > { %v3166_v21 = vpop.eup %3165 }
 0x7cf   : > { %v3168_v22 = vpop.eup %3167  ;;  %v1961_v38 = vmul.f32 2.0, %v3166_v21 }
 0x7d0   : > { %v3170_v51 = vpop.eup %3169  ;;  %v1952_v57 = vadd.f32 1.0, %v3168_v22 }
 0x7d1   : > { %v2730_v52 = vadd.f32 -1.0, %v1961_v38  ;;  %v3172_v58 = vpop.eup %3171  ;;  %v1963_v31 = vmul.f32 %v3170_v51, %v4201_v29  ;;  %v4300_v29 = vld [vmem:[#allocation11 + $0x80] ss:$16 sps:$4 sm:$0xff]  }
 0x7d2   : > { %3173 = vrcp.f32 %v1952_v57 }
 0x7d3   : > { %v1964_v24 = vmul.f32 %v3172_v58, %v2730_v52 }
 0x7d5   : > { %v4247_v49 = vadd.f32 %v1964_v24, %v1963_v31 }
 0x7d7   : > { %3175 = vtanh.f32 %v4247_v49 }
 0x7dc   : > { %v3174_v53 = vpop.eup %3173 }
 0x7e1   : > { %v3176_v23 = vpop.eup %3175 }
 0x7e2   : > { %v1967_v26 = vmul.f32 %v3176_v23, %v3174_v53 }
 0x7e4   : > { %v1975_v27 = vpack.c.bf16 %v1967_v26, %v1967_v26 }
 0x7e6   : > { %2009 = vmatmul.mubr.bf16.vlgmr.msra.gmra.mrb[44].mxu0 %v1975_v27  ;;  %2050 = vmatmul.mubr.bf16.vlgmr.msra.gmra.mrb[44].mxu1 %v1975_v27 }
 0x7e7   : > { %2102 = vmatpush1.bf16.msra.mxu0 %v4250_v25  ;;  %2143 = vmatpush1.bf16.msra.mxu1 %v4253_v41 }
 0x7e8   : > { %2103 = vmatprep.subr.bf16.mxu0 %v4256_v44  ;;  %2144 = vmatprep.subr.bf16.mxu1 %v4259_v33 }
 0x7e9   : > { %2133 = vmatprep.mubr.bf16.mxu0 %v4515_v61  ;;  %2174 = vmatprep.mubr.bf16.mxu1 %v4515_v61 }
 0x7eb   : > { %2104 = vmatpush1.bf16.msra.mxu0 %v4264_v34  ;;  %2145 = vmatpush1.bf16.msra.mxu1 %v4267_v54 }
 0x7ec   : > { %2105 = vmatprep.subr.bf16.mxu0 %v4270_v35  ;;  %2146 = vmatprep.subr.bf16.mxu1 %v4273_v36 }
 0x7ef   : > { %2106 = vmatpush1.bf16.msra.mxu0 %v4276_v37  ;;  %2147 = vmatpush1.bf16.msra.mxu1 %v4279_v39 }
 0x7f0   : > { %2107 = vmatprep.subr.bf16.mxu0 %v4282_v40  ;;  %2148 = vmatprep.subr.bf16.mxu1 %v4285_v63 }
 0x7f3   : > { %2108 = vmatpush1.bf16.msra.mxu0 %v4288_v2  ;;  %2149 = vmatpush1.bf16.msra.mxu1 %v4291_v30 }
 0x7f4   : > { %2109 = vmatprep.subr.bf16.mxu0 %v4294_v28  ;;  %2150 = vmatprep.subr.bf16.mxu1 %v4297_v45 }
 0x7f7   : > { %2110 = vmatpush1.bf16.msra.mxu0 %v4300_v29  ;;  %2151 = vmatpush1.bf16.msra.mxu1 %v4303_v48 }
 0x7f8   : > { %2111 = vmatprep.subr.bf16.mxu0 %v4306_v50  ;;  %2152 = vmatprep.subr.bf16.mxu1 %v4309_v62 }
 0x7fb   : > { %2112 = vmatpush1.bf16.msra.mxu0 %v4312_v32  ;;  %2153 = vmatpush1.bf16.msra.mxu1 %v4315_v46 }
 0x7fc   : > { %2113 = vmatprep.subr.bf16.mxu0 %v4318_v47  ;;  %2154 = vmatprep.subr.bf16.mxu1 %v4321_v55 }
 0x7ff   : > { %2114 = vmatpush1.bf16.msra.mxu0 %v4324_v56  ;;  %2155 = vmatpush1.bf16.msra.mxu1 %v4327_v59 }
 0x800   : > { %2115 = vmatprep.subr.bf16.mxu0 %v4330_v60  ;;  %2156 = vmatprep.subr.bf16.mxu1 %v4333_v0 }
 0x803   : > { %2116 = vmatpush1.bf16.msra.mxu0 %v4336_v1  ;;  %2157 = vmatpush1.bf16.msra.mxu1 %v4339_v3 }
 0x804   : > { %2226 = vmatprep.subr.bf16.mxu0 %v4236_v42  ;;  %2267 = vmatprep.subr.bf16.mxu1 %v4239_v43 }
 0x8b9   : > { %v2010_v4 = vpop.f32.mrb[44].mxu0  ;;  %v2051_v5 = vpop.f32.mrb[44].mxu1 }
 0x8ba   : > { %v2058_v7 = vadd.f32 %v2010_v4, %v4527_v6  ;;  %v2060_v9 = vadd.f32 %v2051_v5, %v4528_v8  ;;  %v2012_v10 = vpop.f32.mrb[45].mxu0  ;;  %v2053_v11 = vpop.f32.mrb[45].mxu1 }
 0x8bb   : > { %v2059_v13 = vadd.f32 %v2012_v10, %v4529_v12  ;;  %v2061_v15 = vadd.f32 %v2053_v11, %v4530_v14  ;;  %v2014_v16 = vpop.f32.mrb[46].mxu0  ;;  %v2055_v17 = vpop.f32.mrb[46].mxu1 }
 0x8bc   : > { %v2731_v18 = vmul.f32 -1.442695, %v2058_v7  ;;  %v2733_v19 = vmul.f32 -1.442695, %v2060_v9  ;;  %v2015_v20 = vpop.f32.mrb[47].mxu0  ;;  %v2056_v42 = vpop.f32.mrb[47].mxu1 }
 0x8bd   : > { %v2732_v21 = vmul.f32 -1.442695, %v2059_v13  ;;  %v2734_v38 = vmul.f32 -1.442695, %v2061_v15  ;;  %v3079_v20 = vld [vmem:[#allocation12] sm:$0xff]   ;;  %v3530_v42 = vmov 0.0  }
 0x8be   : > { %3177 = vpow2.f32 %v2731_v18 }
 0x8bf   : > { %3179 = vpow2.f32 %v2733_v19 }
 0x8c0   : > { %3181 = vpow2.f32 %v2732_v21  ;;  %v3080_v21 = vld [vmem:[#allocation12 + $0x8] sm:$0xff]  }
 0x8c8   : > { %v3178_v43 = vpop.eup %3177 }
 0x8c9   : > { %v3180_v22 = vpop.eup %3179  ;;  %v2074_v57 = vadd.f32 1.0, %v3178_v43  ;;  %v3081_v43 = vld [vmem:[#allocation12 + $0x10] sm:$0xff]  }
 0x8ca   : > { %v3182_v51 = vpop.eup %3181  ;;  %v2076_v52 = vadd.f32 1.0, %v3180_v22  ;;  %v3082_v22 = vld [vmem:[#allocation12 + $0x18] sm:$0xff]  }
 0x8cb   : > { %v2075_v58 = vadd.f32 1.0, %v3182_v51  ;;  %v3084_v51 = vld [vmem:[#allocation12 + $0x28] sm:$0xff]  }
 0x8cc   : > { %3183 = vrcp.f32 %v2076_v52  ;;  %v3085_v52 = vld [vmem:[#allocation12 + $0x30] sm:$0xff]  }
 0x8cd   : > { %3185 = vpow2.f32 %v2734_v38  ;;  %v3083_v38 = vld [vmem:[#allocation12 + $0x20] sm:$0xff]  }
 0x8ce   : > { %3187 = vrcp.f32 %v2075_v58  ;;  %v3086_v58 = vld [vmem:[#allocation12 + $0x38] sm:$0xff]  }
 0x8cf   : > { %3189 = vrcp.f32 %v2074_v57 }
 0x8d6   : > { %v3184_v24 = vpop.eup %3183 }
 0x8d7   : > { %v3186_v31 = vpop.eup %3185  ;;  %v2086_v53 = vmul.f32 2.0, %v3184_v24 }
 0x8d8   : > { %v3188_v23 = vpop.eup %3187  ;;  %v2077_v4 = vadd.f32 1.0, %v3186_v31  ;;  %v4535_v31 = vld [vmem:[#allocation39_spill] sm:$0xff] }
 0x8d9   : > { %v2735_v26 = vadd.f32 -1.0, %v2086_v53  ;;  %v3190_v27 = vpop.eup %3189  ;;  %v2088_v6 = vmul.f32 %v3188_v23, %v4247_v49  ;;  %v4536_v23 = vld [vmem:[#allocation40_spill] sm:$0xff] }
 0x8da   : > { %3191 = vrcp.f32 %v2077_v4 }
 0x8db   : > { %v2089_v5 = vmul.f32 %v3190_v27, %v2735_v26 }
 0x8dd   : > { %v4349_v7 = vadd.f32 %v2089_v5, %v2088_v6  ;;  %v4537_v5 = vld [vmem:[#allocation41_spill] sm:$0xff] }
 0x8df   : > { %3193 = vtanh.f32 %v4349_v7 }
 0x8e4   : > { %v3192_v8 = vpop.eup %3191 }
 0x8e9   : > { %v3194_v9 = vpop.eup %3193 }
 0x8ea   : > { %v2092_v10 = vmul.f32 %v3194_v9, %v3192_v8 }
 0x8ec   : > { %v2100_v11 = vpack.c.bf16 %v2092_v10, %v2092_v10 }
 0x8ee   : > { %2134 = vmatmul.mubr.bf16.vlgmr.msra.gmra.mrb[48].mxu0 %v2100_v11  ;;  %2175 = vmatmul.mubr.bf16.vlgmr.msra.gmra.mrb[48].mxu1 %v2100_v11 }
 0x8ef   : > { %2227 = vmatpush1.bf16.msra.mxu0 %v4250_v25  ;;  %2268 = vmatpush1.bf16.msra.mxu1 %v4253_v41  ;;  %v4531_v25 = vld [vmem:[#allocation35_spill] sm:$0xff] }
 0x8f0   : > { %2228 = vmatprep.subr.bf16.mxu0 %v4256_v44  ;;  %2269 = vmatprep.subr.bf16.mxu1 %v4259_v33  ;;  %v4532_v44 = vld [vmem:[#allocation36_spill] sm:$0xff] }
 0x8f1   : > { %2258 = vmatprep.mubr.bf16.mxu0 %v4515_v61  ;;  %2299 = vmatprep.mubr.bf16.mxu1 %v4515_v61 }
 0x8f3   : > { %2229 = vmatpush1.bf16.msra.mxu0 %v4264_v34  ;;  %2270 = vmatpush1.bf16.msra.mxu1 %v4267_v54 }
 0x8f4   : > { %2230 = vmatprep.subr.bf16.mxu0 %v4270_v35  ;;  %2271 = vmatprep.subr.bf16.mxu1 %v4273_v36  ;;  %v4533_v35 = vld [vmem:[#allocation37_spill] sm:$0xff] }
 0x8f7   : > { %2231 = vmatpush1.bf16.msra.mxu0 %v4276_v37  ;;  %2272 = vmatpush1.bf16.msra.mxu1 %v4279_v39  ;;  %v4534_v37 = vld [vmem:[#allocation38_spill] sm:$0xff] }
 0x8f8   : > { %2232 = vmatprep.subr.bf16.mxu0 %v4282_v40  ;;  %2273 = vmatprep.subr.bf16.mxu1 %v4285_v63 }
 0x8fb   : > { %2233 = vmatpush1.bf16.msra.mxu0 %v4288_v2  ;;  %2274 = vmatpush1.bf16.msra.mxu1 %v4291_v30 }
 0x8fc   : > { %2234 = vmatprep.subr.bf16.mxu0 %v4294_v28  ;;  %2275 = vmatprep.subr.bf16.mxu1 %v4297_v45 }
 0x8ff   : > { %2235 = vmatpush1.bf16.msra.mxu0 %v4300_v29  ;;  %2276 = vmatpush1.bf16.msra.mxu1 %v4303_v48 }
 0x900   : > { %2236 = vmatprep.subr.bf16.mxu0 %v4306_v50  ;;  %2277 = vmatprep.subr.bf16.mxu1 %v4309_v62 }
 0x903   : > { %2237 = vmatpush1.bf16.msra.mxu0 %v4312_v32  ;;  %2278 = vmatpush1.bf16.msra.mxu1 %v4315_v46 }
 0x904   : > { %2238 = vmatprep.subr.bf16.mxu0 %v4318_v47  ;;  %2279 = vmatprep.subr.bf16.mxu1 %v4321_v55 }
 0x907   : > { %2239 = vmatpush1.bf16.msra.mxu0 %v4324_v56  ;;  %2280 = vmatpush1.bf16.msra.mxu1 %v4327_v59 }
 0x908   : > { %2240 = vmatprep.subr.bf16.mxu0 %v4330_v60  ;;  %2281 = vmatprep.subr.bf16.mxu1 %v4333_v0 }
 0x90b   : > { %2241 = vmatpush1.bf16.msra.mxu0 %v4336_v1  ;;  %2282 = vmatpush1.bf16.msra.mxu1 %v4339_v3 }
 0x90c   : > { %2841 = vmatprep.subr.bf16.mxu0 %v3530_v42 }
 0x9c1   : > { %v2135_v61 = vpop.f32.mrb[48].mxu0  ;;  %v2176_v49 = vpop.f32.mrb[48].mxu1 }
 0x9c2   : > { %v2183_v41 = vadd.f32 %v2135_v61, %v4531_v25  ;;  %v2185_v33 = vadd.f32 %v2176_v49, %v4532_v44  ;;  %v2137_v34 = vpop.f32.mrb[49].mxu0  ;;  %v2178_v54 = vpop.f32.mrb[49].mxu1 }
 0x9c3   : > { %v2184_v36 = vadd.f32 %v2137_v34, %v4533_v35  ;;  %v2186_v39 = vadd.f32 %v2178_v54, %v4534_v37  ;;  %v2139_v40 = vpop.f32.mrb[50].mxu0  ;;  %v2180_v63 = vpop.f32.mrb[50].mxu1 }
 0x9c4   : > { %v2736_v2 = vmul.f32 -1.442695, %v2183_v41  ;;  %v2738_v30 = vmul.f32 -1.442695, %v2185_v33  ;;  %v2140_v28 = vpop.f32.mrb[51].mxu0  ;;  %v2181_v45 = vpop.f32.mrb[51].mxu1 }
 0x9c5   : > { %v2737_v29 = vmul.f32 -1.442695, %v2184_v36  ;;  %v2739_v62 = vmul.f32 -1.442695, %v2186_v39 }
 0x9c6   : > { %3195 = vpow2.f32 %v2736_v2 }
 0x9c7   : > { %3197 = vpow2.f32 %v2738_v30 }
 0x9c8   : > { %3199 = vpow2.f32 %v2737_v29 }
 0x9d0   : > { %v3196_v48 = vpop.eup %3195 }
 0x9d1   : > { %v3198_v50 = vpop.eup %3197  ;;  %v2199_v55 = vadd.f32 1.0, %v3196_v48 }
 0x9d2   : > { %v3200_v32 = vpop.eup %3199  ;;  %v2201_v46 = vadd.f32 1.0, %v3198_v50 }
 0x9d3   : > { %v2200_v47 = vadd.f32 1.0, %v3200_v32 }
 0x9d4   : > { %3201 = vrcp.f32 %v2201_v46 }
 0x9d5   : > { %3203 = vpow2.f32 %v2739_v62 }
 0x9d6   : > { %3205 = vrcp.f32 %v2200_v47 }
 0x9d7   : > { %3207 = vrcp.f32 %v2199_v55  ;;  %v2746_v55 = vld [vmem:[%s4539_s9] ss:$0 sm:$0xff] }
 0x9de   : > { %v3202_v56 = vpop.eup %3201 }
 0x9df   : > { %v3204_v59 = vpop.eup %3203  ;;  %v2211_v60 = vmul.f32 2.0, %v3202_v56 }
 0x9e0   : > { %v3206_v0 = vpop.eup %3205  ;;  %v2202_v12 = vadd.f32 1.0, %v3204_v59 }
 0x9e1   : > { %v2740_v1 = vadd.f32 -1.0, %v2211_v60  ;;  %v3208_v3 = vpop.eup %3207  ;;  %v2213_v14 = vmul.f32 %v3206_v0, %v4349_v7  ;;  %v4538_v7 = vld [vmem:[#allocation42_spill] sm:$0xff] }
 0x9e2   : > { %3209 = vrcp.f32 %v2202_v12 }
 0x9e3   : > { %v2214_v13 = vmul.f32 %v3208_v3, %v2740_v1 }
 0x9e5   : > { %v4389_v15 = vadd.f32 %v2214_v13, %v2213_v14 }
 0x9e7   : > { %3211 = vtanh.f32 %v4389_v15 }
 0x9ec   : > { %v3210_v16 = vpop.eup %3209 }
 0x9f1   : > { %v3212_v17 = vpop.eup %3211 }
 0x9f2   : > { %v2217_v18 = vmul.f32 %v3212_v17, %v3210_v16 }
 0x9f4   : > { %v2225_v19 = vpack.c.bf16 %v2217_v18, %v2217_v18 }
 0x9f6   : > { %2259 = vmatmul.mubr.bf16.vlgmr.msra.gmra.mrb[52].mxu0 %v2225_v19  ;;  %2300 = vmatmul.mubr.bf16.vlgmr.msra.gmra.mrb[52].mxu1 %v2225_v19 }
 0x9f7   : > { %2842 = vmatpush3.bf16.msra.mxu0 %v3079_v20  ;;  %2857 = vmatprep.mubr.msk.bf16.mxu0 %vm3531_vm0, %v3530_v42 }
 0x9f8   : > { %2843 = vmatprep.subr.bf16.mxu0 %v3530_v42 }
 0x9fb   : > { %2844 = vmatpush3.bf16.msra.mxu0 %v3080_v21 }
 0x9fc   : > { %2845 = vmatprep.subr.bf16.mxu0 %v3530_v42 }
 0x9ff   : > { %2846 = vmatpush3.bf16.msra.mxu0 %v3081_v43 }
 0xa00   : > { %2847 = vmatprep.subr.bf16.mxu0 %v3530_v42 }
 0xa03   : > { %2848 = vmatpush3.bf16.msra.mxu0 %v3082_v22 }
 0xa04   : > { %2849 = vmatprep.subr.bf16.mxu0 %v3530_v42 }
 0xa07   : > { %2850 = vmatpush3.bf16.msra.mxu0 %v3083_v38 }
 0xa08   : > { %2851 = vmatprep.subr.bf16.mxu0 %v3530_v42 }
 0xa0b   : > { %2852 = vmatpush3.bf16.msra.mxu0 %v3084_v51 }
 0xa0c   : > { %2853 = vmatprep.subr.bf16.mxu0 %v3530_v42 }
 0xa0f   : > { %2854 = vmatpush3.bf16.msra.mxu0 %v3085_v52 }
 0xa10   : > { %2855 = vmatprep.subr.bf16.mxu0 %v3530_v42 }
 0xa13   : > { %2856 = vmatpush3.bf16.msra.mxu0 %v3086_v58 }
 0xac9   : > { %v2260_v57 = vpop.f32.mrb[52].mxu0  ;;  %v2301_v24 = vpop.f32.mrb[52].mxu1 }
 0xaca   : > { %v2308_v53 = vadd.f32 %v2260_v57, %v4535_v31  ;;  %v2310_v26 = vadd.f32 %v2301_v24, %v4536_v23  ;;  %v2262_v27 = vpop.f32.mrb[53].mxu0  ;;  %v2303_v4 = vpop.f32.mrb[53].mxu1 }
 0xacb   : > { %v2309_v6 = vadd.f32 %v2262_v27, %v4537_v5  ;;  %v2311_v8 = vadd.f32 %v2303_v4, %v4538_v7  ;;  %v2264_v9 = vpop.f32.mrb[54].mxu0  ;;  %v2305_v10 = vpop.f32.mrb[54].mxu1 }
 0xacc   : > { %v2741_v11 = vmul.f32 -1.442695, %v2308_v53  ;;  %v2743_v61 = vmul.f32 -1.442695, %v2310_v26  ;;  %v2265_v49 = vpop.f32.mrb[55].mxu0  ;;  %v2306_v25 = vpop.f32.mrb[55].mxu1 }
 0xacd   : > { %v2742_v41 = vmul.f32 -1.442695, %v2309_v6  ;;  %v2744_v34 = vmul.f32 -1.442695, %v2311_v8 }
 0xace   : > { %3213 = vpow2.f32 %v2741_v11 }
 0xacf   : > { %3215 = vpow2.f32 %v2743_v61 }
 0xad0   : > { %3217 = vpow2.f32 %v2742_v41 }
 0xad8   : > { %v3214_v44 = vpop.eup %3213 }
 0xad9   : > { %v3216_v33 = vpop.eup %3215  ;;  %v2324_v37 = vadd.f32 1.0, %v3214_v44 }
 0xada   : > { %v3218_v54 = vpop.eup %3217  ;;  %v2326_v35 = vadd.f32 1.0, %v3216_v33 }
 0xadb   : > { %v2325_v36 = vadd.f32 1.0, %v3218_v54 }
 0xadc   : > { %3219 = vrcp.f32 %v2326_v35 }
 0xadd   : > { %3221 = vpow2.f32 %v2744_v34 }
 0xade   : > { %3223 = vrcp.f32 %v2325_v36 }
 0xadf   : > { %3225 = vrcp.f32 %v2324_v37 }
 0xae6   : > { %v3220_v39 = vpop.eup %3219 }
 0xae7   : > { %v3222_v40 = vpop.eup %3221  ;;  %v2336_v63 = vmul.f32 2.0, %v3220_v39 }
 0xae8   : > { %v3224_v2 = vpop.eup %3223  ;;  %v2327_v45 = vadd.f32 1.0, %v3222_v40 }
 0xae9   : > { %v2745_v30 = vadd.f32 -1.0, %v2336_v63  ;;  %v3226_v28 = vpop.eup %3225  ;;  %v2338_v48 = vmul.f32 %v3224_v2, %v4389_v15 }
 0xaea   : > { %3227 = vrcp.f32 %v2327_v45 }
 0xaeb   : > { %v2339_v29 = vmul.f32 %v3226_v28, %v2745_v30 }
 0xaed   : > { %v2340_v50 = vadd.f32 %v2339_v29, %v2338_v48 }
 0xaef   : > { %3229 = vtanh.f32 %v2340_v50 }
 0xaf4   : > { %v3228_v62 = vpop.eup %3227 }
 0xaf9   : > { %v3230_v32 = vpop.eup %3229 }
 0xafa   : > { %v2342_v46 = vmul.f32 %v3230_v32, %v3228_v62 }
 0xafc   : > { %v2343_v47 = vpack.c.bf16 %v2342_v46, %v2342_v46 }
 0xafe   : > { %2858 = vmatmul.mubr.bf16.vlgmr.msra.gmra.mrb[56].mxu0 %v2343_v47 }
 0xbd1   : > { %v2449_v56 = vpop.f32.mrb[56].mxu0 }
 0xbd2   : > { %v2450_v59 = vadd.f32 %v2746_v55, %v2449_v56  ;;  %v2859_v60 = vpop.f32.mrb[57].mxu0 }
 0xbd3   : > { %v2452_v0 = vpop.f32.mrb[58].mxu0 }
 0xbd4   : > { %2455 = vmax.xlane.f32.xlu0 %v2450_v59  ;;  %v2860_v1 = vpop.f32.mrb[59].mxu0 }
 0xc61   : > { %v2456_v3 = vpop.xlane.xlu0 %2455 }
 0xc62   : > { %v2457_v12 = vsub.f32 %v2450_v59, %v2456_v3 }
 0xc64   : > { %v2458_v13 = vmul.f32 1.442695, %v2457_v12 }
 0xc66   : > { %3231 = vpow2.f32 %v2458_v13 }
 0xc70   : > { %v3232_v14 = vpop.eup %3231 }
 0xc71   : > { %2460 = vadd.xlane.f32.xlu0 %v3232_v14 }
 0xcfe   : > { %v2461_v15 = vpop.xlane.xlu0 %2460 }
 0xcff   : > { %3233 = vlog2.f32 %v2461_v15 }
 0xd09   : > { %v3234_v16 = vpop.eup %3233 }
 0xd0a   : > { %v2463_v17 = vmul.f32 0.6931472, %v3234_v16 }
 0xd0c   : > { %v2464_v18 = vsub.f32 %v2457_v12, %v2463_v17 }
 0xd0e   : > { %2465 = vst [vmem:[%s450_s22] sm:$0xff] %v2464_v18 }
 0xd0f   : > { %3450 = shalt.err (!%p3447_p8)
}
 0xd10   : > { %s3451_s10 = scalar_lea.hbm %s4405_s30, 128  ;;  %s3455_s24 = scalar_lea.hbm %s4540_s25, 256 }
 0xd11   : > { %p3452_p6 = scmp.ne.s32.totalorder %s4405_s30, %s3451_s10  ;;  %p3456_p3 = scmp.lt.u32.totalorder %s4405_s30, %s4540_s25 }
 0xd12   : > { %p3457_p0 = scmp.lt.u32.totalorder %s3455_s24, %s3451_s10  ;;  %p3459_p2 = scmp.lt.u32.totalorder %s3451_s10, %s4405_s30 }
 0xd13   : > { %p3453_p9 = pnand %p3452_p6, %p4541_p7 }
 0xd14   : > { %p3458_p5 = por %p3457_p0, %p3456_p3 }
 0xd15   : > { %p3454_p4 = pneg %p3453_p9 }
 0xd16   : > { %p3460_p10 = por %p3459_p2, %p3458_p5 }
 0xd18   : > { %p3461_p1 = pnand %p3460_p10, %p3454_p4 }
 0xd1a   : > { %3464 = shalt.err (!%p3461_p1)
}
 0xd1b   : > { %2883 = dma.vmem_to_hbm [thread:$0]  (%p4541_p7), %s4407_s1, 128, %s4405_s30, %s2467_s27  }
 0xd1c PF: > { %s2492_s12 = sand.u32 1, %s3503_s13   ;;  %p4542_p11 = scmp.ne.s32.totalorder %s4483_s17, 0 }
 0xd1d   : > { %p4543_p12 = scmp.ge.s32.totalorder %s3515_s16, 2  ;;  %s2493_s23 = scalar_lea.sflag [#allocation5], %s2492_s12 }
 0xd1f   : > { %p2906_p13 = pnand %p4543_p12, %p4542_p11 }
 0xd21   : > { %3498 = dma.done.wait (!%p2906_p13), %s2493_s23, 128  }
 0xd22   : > { %3500 = vsyncadd (!%p2906_p13), %s2493_s23, 4294967168  ;;  %p26_p8 = scmp.ge.s32.totalorder %s3757_s11, 4   ;;  %s4544_s13 = smov %s3507_s14 }
 0xd23   : > { %s4545_s14 = smov %s3511_s15  ;;  %s4546_s15 = smov %s3769_s29 }
 0xd24   : > { %s4547_s16 = smov %s3757_s11  ;;  %28 = sbr.rel (!%p26_p8) target bundleno = 12 (0xc), region = 133 }
 0xd2b   :  { %2498 = vsyncpa [#allocation4], 1 }
 0xd2c   :  { %2500 = vsyncpa [#allocation4 + $0x1], 1 }
 0xd2d   :  { %2501 = vsyncpa [#allocation7], 1 }
 0xd2e   :  { %2502 = vsyncpa [#allocation10], 1 }
 0xd2f   :  { %2503 = vsyncpa [#allocation13], 1 }
 0xd30   :  { %2504 = vsyncpa [#allocation5], 1 }
 0xd31   :  { %2506 = vsyncpa [#allocation5 + $0x1], 1 }

</bundles_post_ra>
